<compile_context>
chip_gen: v7x
topology: tpu7x:2x2x1
jax: 0.10.0
libtpu: 0.0.40
codegen_flags: <defaults>
</compile_context>

<pallas_src>
import functools

import jax
import jax.numpy as jnp
from jax.experimental import pallas as pl
from jax.experimental.pallas import tpu as pltpu

# ----- model hyper-parameters (small but TPU-friendly) -----
D_MODEL = 128          # d_model (768 in the paper; kept small + lane aligned)
BOTTLENECK = 16        # bottleneck / down_size / gamma dim (fixed at 16 in module)
MLP_HIDDEN = 4 * D_MODEL
FACT_RANK = 4          # inner dim of FacT_c @ FacT_p
NUM_LAYERS = 3         # last dim of FacT_p (selected by idx)
IDX = 1
LN_EPS = 1e-5
SCALE = 1.0            # adapter_scalar='1.0' (statically folded away in kernel)


def _gelu_tanh(x):
    # tanh-approximate GELU (EUP-friendly lowering).  Python-float constants
    # are weakly typed so the computation stays in x's dtype (f32 or bf16).
    c = 0.7978845608028654  # sqrt(2/pi)
    return 0.5 * x * (1.0 + jnp.tanh(c * (x + 0.044715 * x * x * x)))


def adapter_kernel(x_ref,
                   w1_ref, b1_ref, w2_ref, b2_ref,          # mlp (bf16 W, f32 b)
                   lng_ref, lnb_ref,                        # adapter LayerNorm
                   dwe_ref, dbe_ref,                        # folded down path
                   uw_ref, ub_ref,                          # up_proj
                   o_ref,
                   *, bf16_elementwise):
    x = x_ref[...]                                          # (TM, D) f32
    xb = x.astype(jnp.bfloat16)

    # ---- residual = mlp(x): Linear -> GELU -> Linear (bf16 in, f32 acc) ----
    h = jnp.dot(xb, w1_ref[...], preferred_element_type=jnp.float32) + b1_ref[...]
    if bf16_elementwise:
        # v6e/v7x: bf16 VALU/EUP -> halve VPU/EUP/vreg traffic on the (TM, H) slab.
        h = _gelu_tanh(h.astype(jnp.bfloat16))
    else:
        # v5e and older: no bf16 VPU/EUP; keep elementwise math in f32,
        # cast once for the MXU.
        h = _gelu_tanh(h).astype(jnp.bfloat16)
    residual = jnp.dot(h, w2_ref[...],
                       preferred_element_type=jnp.float32) + b2_ref[...]

    # ---- adapter LayerNorm ('in'), single-pass statistics in f32 ----
    mean = jnp.mean(x, axis=-1, keepdims=True)
    mean_sq = jnp.mean(x * x, axis=-1, keepdims=True)
    var = mean_sq - mean * mean
    xn = (x - mean) * jax.lax.rsqrt(var + LN_EPS) * lng_ref[...] + lnb_ref[...]

    # ---- folded down path: relu(xn @ dw_eff + db_eff) ----
    # (down_proj, *(CP)+gamma*, FacT_d1 pre-folded into dw_eff/db_eff)
    down = jnp.dot(xn.astype(jnp.bfloat16), dwe_ref[...],
                   preferred_element_type=jnp.float32) + dbe_ref[...]
    down = jnp.maximum(down, 0.0)
    # dropout: identity (eval mode)

    # ---- up_proj + residual (scale==1.0 folded away) ----
    up = jnp.dot(down.astype(jnp.bfloat16), uw_ref[...],
                 preferred_element_type=jnp.float32) + ub_ref[...]
    o_ref[...] = (up + residual).astype(o_ref.dtype)


def _bf16_elementwise_ok():
    """bf16 VPU/EUP exists on v6e/v7x; keep elementwise math f32 on v5x/v4/..."""
    try:
        kind = jax.devices()[0].device_kind.lower()
    except Exception:
        return False
    return not any(tag in kind for tag in ("v2", "v3", "v4", "v5"))


def _pick_tm(m):
    """Prefer TM=256 (fills the 256-deep v6e/v7x MXU) only when it still
    leaves >= 4 grid steps (>= 2 per TensorCore under megacore sharding);
    otherwise TM=128 so DMA/compute overlap and both cores stay busy."""
    if pl.cdiv(m, 256) >= 4:
        return 256
    return 128


def _resident_spec(shape):
    """Constant-index full-array spec for weights/biases.

    The block index never changes across the grid, so single-buffer it:
    double-buffering buys no overlap and only doubles the VMEM footprint."""
    try:
        return pl.BlockSpec(shape, lambda i: (0, 0),
                            pipeline_mode=pl.Buffered(1))
    except Exception:
        # Fallback for jax versions without pipeline_mode on BlockSpec.
        return pl.BlockSpec(shape, lambda i: (0, 0))


def _derived_vmem_limit(kparams, tm, d, h):
    """Footprint-derived VMEM budget (bytes), clamped under v7x's 64 MiB."""
    weights = sum(int(p.size) * p.dtype.itemsize for p in kparams)   # Buffered(1)
    io_tiles = 2 * 2 * tm * d * 4            # x + out tiles, double-buffered, f32
    interm = tm * h * (4 + 2) + 6 * tm * d * 4   # (TM,H) f32+bf16 slabs, (TM,D) temps
    need = weights + io_tiles + interm
    return int(min(max(int(1.5 * need), 16 * 1024 * 1024), 40 * 1024 * 1024))


def adapter_imo_forward(x, params):
    """x: (B, N, D) float32. params: tuple of 2-D f32 arrays (see main)."""
    B, N, D = x.shape
    assert D == D_MODEL
    M = B * N

    (w1, b1, w2, b2, lng, lnb, dw, db, cp, gam, d1w, d1b, uw, ub) = params

    # ---- wrapper-side constant folding of the bottleneck algebra (f32) ----
    s = cp + gam                                   # (1, R)
    dw_eff = (dw * s) @ d1w                        # (D, R)
    db_eff = (db * s) @ d1w + d1b                  # (1, R)

    bf = lambda a: a.astype(jnp.bfloat16)
    kparams = (bf(w1), b1, bf(w2), b2, lng, lnb,
               bf(dw_eff), db_eff, bf(uw), ub)

    # ---- pick token tile and pad tokens to a multiple of TM ----
    tm = _pick_tm(M)
    xf = x.reshape(M, D)
    n_tiles = pl.cdiv(M, tm)
    Mp = n_tiles * tm
    if Mp != M:
        xf = jnp.pad(xf, ((0, Mp - M), (0, 0)))

    in_specs = [pl.BlockSpec((tm, D), lambda i: (i, 0))] + [
        _resident_spec(p.shape) for p in kparams
    ]

    H = w1.shape[1]
    kernel = functools.partial(adapter_kernel,
                               bf16_elementwise=_bf16_elementwise_ok())

    out = pl.pallas_call(
        kernel,
        out_shape=jax.ShapeDtypeStruct((Mp, D), x.dtype),
        grid=(n_tiles,),
        in_specs=in_specs,
        out_specs=pl.BlockSpec((tm, D), lambda i: (i, 0)),
        compiler_params=pltpu.CompilerParams(
            dimension_semantics=("parallel",),
            vmem_limit_bytes=_derived_vmem_limit(kparams, tm, D, H)),
    )(xf, *kparams)

    if Mp != M:
        out = out[:M]
    return out.reshape(B, N, D)


def reference_forward(x, params):
    """Plain-JAX f32 reference with the original (unfolded) module algebra."""
    (w1, b1, w2, b2, lng, lnb, dw, db, cp, gam, d1w, d1b, uw, ub) = params
    h = _gelu_tanh(x @ w1 + b1)
    residual = h @ w2 + b2
    mean = jnp.mean(x, axis=-1, keepdims=True)
    var = jnp.mean(jnp.square(x - mean), axis=-1, keepdims=True)
    xn = (x - mean) * jax.lax.rsqrt(var + LN_EPS) * lng + lnb
    dp = xn @ dw + db
    z = dp * cp + gam * dp
    down = jnp.maximum(z @ d1w + d1b, 0.0)
    up = (down @ uw + ub) * SCALE
    return up + residual


if __name__ == "__main__":
    key = jax.random.PRNGKey(0)
    ks = jax.random.split(key, 16)

    # M = B*N = 512 -> TM=128, grid=(4,): >= 2 steps per TensorCore on v7x,
    # so megacore sharding and the x/out tile DMA prefetch both stay active.
    B, N, D, H, R = 4, 128, D_MODEL, MLP_HIDDEN, BOTTLENECK

    x = jax.random.normal(ks[0], (B, N, D), dtype=jnp.float32)

    # mlp (Linear -> GELU -> Linear), weights in (in, out) layout
    w1 = jax.random.normal(ks[1], (D, H), dtype=jnp.float32) * 0.05
    b1 = jax.random.normal(ks[2], (1, H), dtype=jnp.float32) * 0.05
    w2 = jax.random.normal(ks[3], (H, D), dtype=jnp.float32) * 0.05
    b2 = jax.random.normal(ks[4], (1, D), dtype=jnp.float32) * 0.05

    # adapter LayerNorm (elementwise affine)
    lng = jnp.ones((1, D), dtype=jnp.float32)
    lnb = jnp.zeros((1, D), dtype=jnp.float32)

    # down_proj / up_proj (deterministic non-trivial values; module init would
    # zero up_proj which makes the adapter branch vanish)
    dw = jax.random.normal(ks[5], (D, R), dtype=jnp.float32) * 0.1
    db = jax.random.normal(ks[6], (1, R), dtype=jnp.float32) * 0.1
    uw = jax.random.normal(ks[7], (R, D), dtype=jnp.float32) * 0.1
    ub = jax.random.normal(ks[8], (1, D), dtype=jnp.float32) * 0.1

    # FacT factors and CP = (FacT_c @ FacT_p)[..., idx]  (tiny matmul -> glue)
    fact_c = jax.random.normal(ks[9], (R, FACT_RANK), dtype=jnp.float32) * 0.5
    fact_p = jax.random.normal(ks[10], (FACT_RANK, NUM_LAYERS), dtype=jnp.float32) * 0.5
    cp = (fact_c @ fact_p)[:, IDX].reshape(1, R)

    # gamma (layer-scale vector, dim=16, init 1.0)
    gam = jnp.ones((1, R), dtype=jnp.float32)

    # FacT_d1: shared Linear(bottleneck -> bottleneck)
    d1w = jax.random.normal(ks[11], (R, R), dtype=jnp.float32) * 0.2
    d1b = jax.random.normal(ks[12], (1, R), dtype=jnp.float32) * 0.1

    params = (w1, b1, w2, b2, lng, lnb, dw, db, cp, gam, d1w, d1b, uw, ub)

    out = adapter_imo_forward(x, params)
    out = jax.block_until_ready(out)

    ref = reference_forward(x, params)
    assert out.shape == (B, N, D)
    # bf16 matmul inputs (f32 accumulation), optional bf16 GELU vs f32 ref:
    # ~1e-3 drift expected.
    assert jnp.allclose(out, ref, atol=3e-2, rtol=3e-2), (
        float(jnp.max(jnp.abs(out - ref))))

    print("KERNEL_OK")
</pallas_src>

<mosaic_0001>
module attributes {stable_mosaic.version = 11 : i64} {
  func.func @adapter_kernel(%arg0: i32, %arg1: memref<128x128xf32, #tpu.memory_space<vmem>>, %arg2: memref<128x512xbf16, #tpu.memory_space<vmem>>, %arg3: memref<1x512xf32, #tpu.memory_space<vmem>>, %arg4: memref<512x128xbf16, #tpu.memory_space<vmem>>, %arg5: memref<1x128xf32, #tpu.memory_space<vmem>>, %arg6: memref<1x128xf32, #tpu.memory_space<vmem>>, %arg7: memref<1x128xf32, #tpu.memory_space<vmem>>, %arg8: memref<128x16xbf16, #tpu.memory_space<vmem>>, %arg9: memref<1x16xf32, #tpu.memory_space<vmem>>, %arg10: memref<16x128xbf16, #tpu.memory_space<vmem>>, %arg11: memref<1x128xf32, #tpu.memory_space<vmem>>, %arg12: memref<128x128xf32, #tpu.memory_space<vmem>>) attributes {dimension_semantics = [#tpu.dimension_semantics<parallel>], iteration_bounds = array<i64: 4>, scalar_prefetch = 0 : i64, scratch_operands = 0 : i64, tpu.core_type = #tpu.core_type<tc>, window_params = [{transform_indices = @transform_0, window_bounds = array<i64: 128, 128>}, {pipeline_mode = #tpu.pipeline_mode<synchronous>, transform_indices = @transform_1, window_bounds = array<i64: 128, 512>}, {pipeline_mode = #tpu.pipeline_mode<synchronous>, transform_indices = @transform_2, window_bounds = array<i64: 1, 512>}, {pipeline_mode = #tpu.pipeline_mode<synchronous>, transform_indices = @transform_3, window_bounds = array<i64: 512, 128>}, {pipeline_mode = #tpu.pipeline_mode<synchronous>, transform_indices = @transform_4, window_bounds = array<i64: 1, 128>}, {pipeline_mode = #tpu.pipeline_mode<synchronous>, transform_indices = @transform_5, window_bounds = array<i64: 1, 128>}, {pipeline_mode = #tpu.pipeline_mode<synchronous>, transform_indices = @transform_6, window_bounds = array<i64: 1, 128>}, {pipeline_mode = #tpu.pipeline_mode<synchronous>, transform_indices = @transform_7, window_bounds = array<i64: 128, 16>}, {pipeline_mode = #tpu.pipeline_mode<synchronous>, transform_indices = @transform_8, window_bounds = array<i64: 1, 16>}, {pipeline_mode = #tpu.pipeline_mode<synchronous>, transform_indices = @transform_9, window_bounds = array<i64: 16, 128>}, {pipeline_mode = #tpu.pipeline_mode<synchronous>, transform_indices = @transform_10, window_bounds = array<i64: 1, 128>}, {transform_indices = @transform_11, window_bounds = array<i64: 128, 128>}]} {
    %c0 = arith.constant 0 : index
    %c0_0 = arith.constant 0 : index
    %0 = vector.load %arg1[%c0, %c0_0] : memref<128x128xf32, #tpu.memory_space<vmem>>, vector<128x128xf32>
    %1 = arith.truncf %0 : vector<128x128xf32> to vector<128x128xbf16>
    %c0_1 = arith.constant 0 : index
    %c0_2 = arith.constant 0 : index
    %2 = vector.load %arg2[%c0_1, %c0_2] : memref<128x512xbf16, #tpu.memory_space<vmem>>, vector<128x512xbf16>
    %cst = arith.constant dense<0.000000e+00> : vector<128x512xf32>
    %3 = tpu.matmul %1, %2, %cst {dimension_numbers = #tpu.dot_dimension_numbers<[1], [0], [0], [1], [0, 0, 1, 1], [], []>} : vector<128x128xbf16>, vector<128x512xbf16>, vector<128x512xf32> -> vector<128x512xf32>
    %c0_3 = arith.constant 0 : index
    %c0_4 = arith.constant 0 : index
    %4 = vector.load %arg3[%c0_3, %c0_4] : memref<1x512xf32, #tpu.memory_space<vmem>>, vector<1x512xf32>
    %5 = vector.broadcast %4 : vector<1x512xf32> to vector<128x512xf32>
    %6 = arith.addf %3, %5 : vector<128x512xf32>
    %7 = arith.truncf %6 : vector<128x512xf32> to vector<128x512xbf16>
    %cst_5 = arith.constant 5.000000e-01 : bf16
    %8 = vector.broadcast %cst_5 : bf16 to vector<128x512xbf16>
    %9 = arith.mulf %8, %7 : vector<128x512xbf16>
    %cst_6 = arith.constant 4.467770e-02 : bf16
    %10 = vector.broadcast %cst_6 : bf16 to vector<128x512xbf16>
    %11 = arith.mulf %10, %7 : vector<128x512xbf16>
    %12 = arith.mulf %11, %7 : vector<128x512xbf16>
    %13 = arith.mulf %12, %7 : vector<128x512xbf16>
    %14 = arith.addf %7, %13 : vector<128x512xbf16>
    %cst_7 = arith.constant 7.968750e-01 : bf16
    %15 = vector.broadcast %cst_7 : bf16 to vector<128x512xbf16>
    %16 = arith.mulf %15, %14 : vector<128x512xbf16>
    %17 = math.tanh %16 : vector<128x512xbf16>
    %cst_8 = arith.constant 1.000000e+00 : bf16
    %18 = vector.broadcast %cst_8 : bf16 to vector<128x512xbf16>
    %19 = arith.addf %18, %17 : vector<128x512xbf16>
    %20 = arith.mulf %9, %19 : vector<128x512xbf16>
    %c0_9 = arith.constant 0 : index
    %c0_10 = arith.constant 0 : index
    %21 = vector.load %arg4[%c0_9, %c0_10] : memref<512x128xbf16, #tpu.memory_space<vmem>>, vector<512x128xbf16>
    %cst_11 = arith.constant dense<0.000000e+00> : vector<128x128xf32>
    %22 = tpu.matmul %20, %21, %cst_11 {dimension_numbers = #tpu.dot_dimension_numbers<[1], [0], [0], [1], [0, 0, 1, 1], [], []>} : vector<128x512xbf16>, vector<512x128xbf16>, vector<128x128xf32> -> vector<128x128xf32>
    %c0_12 = arith.constant 0 : index
    %c0_13 = arith.constant 0 : index
    %23 = vector.load %arg5[%c0_12, %c0_13] : memref<1x128xf32, #tpu.memory_space<vmem>>, vector<1x128xf32>
    %24 = vector.broadcast %23 : vector<1x128xf32> to vector<128x128xf32>
    %25 = arith.addf %22, %24 : vector<128x128xf32>
    %cst_14 = arith.constant dense<0.000000e+00> : vector<128xf32>
    %26 = vector.multi_reduction <add>, %0, %cst_14 [1] : vector<128x128xf32> to vector<128xf32>
    %27 = vector.shape_cast %26 : vector<128xf32> to vector<128x1xf32>
    %cst_15 = arith.constant 1.280000e+02 : f32
    %28 = vector.broadcast %cst_15 : f32 to vector<128x1xf32>
    %29 = arith.divf %27, %28 : vector<128x1xf32>
    %30 = arith.mulf %0, %0 : vector<128x128xf32>
    %cst_16 = arith.constant dense<0.000000e+00> : vector<128xf32>
    %31 = vector.multi_reduction <add>, %30, %cst_16 [1] : vector<128x128xf32> to vector<128xf32>
    %32 = vector.shape_cast %31 : vector<128xf32> to vector<128x1xf32>
    %cst_17 = arith.constant 1.280000e+02 : f32
    %33 = vector.broadcast %cst_17 : f32 to vector<128x1xf32>
    %34 = arith.divf %32, %33 : vector<128x1xf32>
    %35 = arith.mulf %29, %29 : vector<128x1xf32>
    %36 = arith.subf %34, %35 : vector<128x1xf32>
    %37 = vector.broadcast %29 : vector<128x1xf32> to vector<128x128xf32>
    %38 = arith.subf %0, %37 : vector<128x128xf32>
    %cst_18 = arith.constant 9.99999974E-6 : f32
    %39 = vector.broadcast %cst_18 : f32 to vector<128x1xf32>
    %40 = arith.addf %36, %39 : vector<128x1xf32>
    %41 = math.rsqrt %40 : vector<128x1xf32>
    %42 = vector.broadcast %41 : vector<128x1xf32> to vector<128x128xf32>
    %43 = arith.mulf %38, %42 : vector<128x128xf32>
    %c0_19 = arith.constant 0 : index
    %c0_20 = arith.constant 0 : index
    %44 = vector.load %arg6[%c0_19, %c0_20] : memref<1x128xf32, #tpu.memory_space<vmem>>, vector<1x128xf32>
    %45 = vector.broadcast %44 : vector<1x128xf32> to vector<128x128xf32>
    %46 = arith.mulf %43, %45 : vector<128x128xf32>
    %c0_21 = arith.constant 0 : index
    %c0_22 = arith.constant 0 : index
    %47 = vector.load %arg7[%c0_21, %c0_22] : memref<1x128xf32, #tpu.memory_space<vmem>>, vector<1x128xf32>
    %48 = vector.broadcast %47 : vector<1x128xf32> to vector<128x128xf32>
    %49 = arith.addf %46, %48 : vector<128x128xf32>
    %50 = arith.truncf %49 : vector<128x128xf32> to vector<128x128xbf16>
    %c0_23 = arith.constant 0 : index
    %c0_24 = arith.constant 0 : index
    %51 = vector.load %arg8[%c0_23, %c0_24] : memref<128x16xbf16, #tpu.memory_space<vmem>>, vector<128x16xbf16>
    %cst_25 = arith.constant dense<0.000000e+00> : vector<128x16xf32>
    %52 = tpu.matmul %50, %51, %cst_25 {dimension_numbers = #tpu.dot_dimension_numbers<[1], [0], [0], [1], [0, 0, 1, 1], [], []>} : vector<128x128xbf16>, vector<128x16xbf16>, vector<128x16xf32> -> vector<128x16xf32>
    %c0_26 = arith.constant 0 : index
    %c0_27 = arith.constant 0 : index
    %53 = vector.load %arg9[%c0_26, %c0_27] : memref<1x16xf32, #tpu.memory_space<vmem>>, vector<1x16xf32>
    %54 = vector.broadcast %53 : vector<1x16xf32> to vector<128x16xf32>
    %55 = arith.addf %52, %54 : vector<128x16xf32>
    %cst_28 = arith.constant 0.000000e+00 : f32
    %56 = vector.broadcast %cst_28 : f32 to vector<128x16xf32>
    %57 = arith.maximumf %55, %56 : vector<128x16xf32>
    %58 = arith.truncf %57 : vector<128x16xf32> to vector<128x16xbf16>
    %c0_29 = arith.constant 0 : index
    %c0_30 = arith.constant 0 : index
    %59 = vector.load %arg10[%c0_29, %c0_30] : memref<16x128xbf16, #tpu.memory_space<vmem>>, vector<16x128xbf16>
    %cst_31 = arith.constant dense<0.000000e+00> : vector<128x128xf32>
    %60 = tpu.matmul %58, %59, %cst_31 {dimension_numbers = #tpu.dot_dimension_numbers<[1], [0], [0], [1], [0, 0, 1, 1], [], []>} : vector<128x16xbf16>, vector<16x128xbf16>, vector<128x128xf32> -> vector<128x128xf32>
    %c0_32 = arith.constant 0 : index
    %c0_33 = arith.constant 0 : index
    %61 = vector.load %arg11[%c0_32, %c0_33] : memref<1x128xf32, #tpu.memory_space<vmem>>, vector<1x128xf32>
    %62 = vector.broadcast %61 : vector<1x128xf32> to vector<128x128xf32>
    %63 = arith.addf %60, %62 : vector<128x128xf32>
    %64 = arith.addf %63, %25 : vector<128x128xf32>
    %c0_34 = arith.constant 0 : index
    %c0_35 = arith.constant 0 : index
    %65 = vector.load %arg12[%c0_34, %c0_35] : memref<128x128xf32, #tpu.memory_space<vmem>>, vector<128x128xf32>
    tpu.vector_store %arg12[%c0_34, %c0_35], %64 {strides = array<i32>} : memref<128x128xf32, #tpu.memory_space<vmem>>, vector<128x128xf32>,
    return
  }
  func.func @transform_0(%arg0: i32) -> (i32, i32) {
    %c0_i32 = arith.constant 0 : i32
    %c0_i32_0 = arith.constant 0 : i32
    return %arg0, %c0_i32 : i32, i32
  }
  func.func @transform_1(%arg0: i32) -> (i32, i32) {
    %c0_i32 = arith.constant 0 : i32
    %c0_i32_0 = arith.constant 0 : i32
    %c0_i32_1 = arith.constant 0 : i32
    return %c0_i32, %c0_i32_0 : i32, i32
  }
  func.func @transform_2(%arg0: i32) -> (i32, i32) {
    %c0_i32 = arith.constant 0 : i32
    %c0_i32_0 = arith.constant 0 : i32
    %c0_i32_1 = arith.constant 0 : i32
    return %c0_i32, %c0_i32_0 : i32, i32
  }
  func.func @transform_3(%arg0: i32) -> (i32, i32) {
    %c0_i32 = arith.constant 0 : i32
    %c0_i32_0 = arith.constant 0 : i32
    %c0_i32_1 = arith.constant 0 : i32
    return %c0_i32, %c0_i32_0 : i32, i32
  }
  func.func @transform_4(%arg0: i32) -> (i32, i32) {
    %c0_i32 = arith.constant 0 : i32
    %c0_i32_0 = arith.constant 0 : i32
    %c0_i32_1 = arith.constant 0 : i32
    return %c0_i32, %c0_i32_0 : i32, i32
  }
  func.func @transform_5(%arg0: i32) -> (i32, i32) {
    %c0_i32 = arith.constant 0 : i32
    %c0_i32_0 = arith.constant 0 : i32
    %c0_i32_1 = arith.constant 0 : i32
    return %c0_i32, %c0_i32_0 : i32, i32
  }
  func.func @transform_6(%arg0: i32) -> (i32, i32) {
    %c0_i32 = arith.constant 0 : i32
    %c0_i32_0 = arith.constant 0 : i32
    %c0_i32_1 = arith.constant 0 : i32
    return %c0_i32, %c0_i32_0 : i32, i32
  }
  func.func @transform_7(%arg0: i32) -> (i32, i32) {
    %c0_i32 = arith.constant 0 : i32
    %c0_i32_0 = arith.constant 0 : i32
    %c0_i32_1 = arith.constant 0 : i32
    return %c0_i32, %c0_i32_0 : i32, i32
  }
  func.func @transform_8(%arg0: i32) -> (i32, i32) {
    %c0_i32 = arith.constant 0 : i32
    %c0_i32_0 = arith.constant 0 : i32
    %c0_i32_1 = arith.constant 0 : i32
    return %c0_i32, %c0_i32_0 : i32, i32
  }
  func.func @transform_9(%arg0: i32) -> (i32, i32) {
    %c0_i32 = arith.constant 0 : i32
    %c0_i32_0 = arith.constant 0 : i32
    %c0_i32_1 = arith.constant 0 : i32
    return %c0_i32, %c0_i32_0 : i32, i32
  }
  func.func @transform_10(%arg0: i32) -> (i32, i32) {
    %c0_i32 = arith.constant 0 : i32
    %c0_i32_0 = arith.constant 0 : i32
    %c0_i32_1 = arith.constant 0 : i32
    return %c0_i32, %c0_i32_0 : i32, i32
  }
  func.func @transform_11(%arg0: i32) -> (i32, i32) {
    %c0_i32 = arith.constant 0 : i32
    %c0_i32_0 = arith.constant 0 : i32
    return %arg0, %c0_i32 : i32, i32
  }
}

</mosaic_0001>

<bundles_post_ra>
// kernel: tpu_custom_call.1
= control target key start
LH: loop header
LB: loop body
LE: loop exit
PB: predicated region body
PF: predicated region fallthrough
CT: control target
= control target key end

     0   :  { %s4225_s0 = inlined_call_operand.hbm [shape: f32[512,128], index: 0, kind: input, shape index: {}]   ;;  %s4226_s1 = inlined_call_operand.hbm [shape: bf16[128,512], index: 1, kind: input, shape index: {}]   ;;  %s4227_s2 = inlined_call_operand.vmem [shape: f32[1,512], index: 2, kind: input, shape index: {}]   ;;  %s4228_s3 = inlined_call_operand.hbm [shape: bf16[512,128], index: 3, kind: input, shape index: {}]   ;;  %s4229_s4 = inlined_call_operand.vmem [shape: f32[1,128], index: 4, kind: input, shape index: {}]   ;;  %s4230_s5 = inlined_call_operand.vmem [shape: f32[1,128], index: 5, kind: input, shape index: {}]   ;;  %s4231_s6 = inlined_call_operand.vmem [shape: f32[1,128], index: 6, kind: input, shape index: {}]   ;;  %s4232_s7 = inlined_call_operand.vmem [shape: bf16[128,16], index: 7, kind: input, shape index: {}]   ;;  %s4233_s8 = inlined_call_operand.vmem [shape: f32[1,16], index: 8, kind: input, shape index: {}]   ;;  %s4234_s9 = inlined_call_operand.vmem [shape: bf16[16,128], index: 9, kind: input, shape index: {}]   ;;  %s4235_s10 = inlined_call_operand.vmem [shape: f32[1,128], index: 10, kind: input, shape index: {}]   ;;  %s4236_s11 = inlined_call_operand.hbm [shape: f32[512,128], index: 11, kind: output, shape index: {}]  }
   0x1   :  { %4251 = sst [smem:[#allocation25_spill]] %s4236_s11 }
   0x2   :  { %16 = vsyncpa [#allocation3], 0 }
   0x3   :  { %18 = vsyncpa [#allocation3 + $0x1], 0 }
   0x4   :  { %19 = vsyncpa [#allocation6], 0 }
   0x5   :  { %20 = vsyncpa [#allocation4], 0 }
   0x6   :  { %22 = vsyncpa [#allocation4 + $0x1], 0  ;;  %s3223_s17 = smov 0   ;;  %s3225_s18 = smov 0  }
   0x7   :  { %s3227_s19 = smov 0   ;;  %s3229_s20 = smov 0  }
   0x8 LB: > { %4252 = sst [smem:[#allocation12_spill]] %s3136_s17  ;;  %s3244_s21 = sadd.s32 4294967295, %s3148_s20   ;;  %s3148_s20 = sphi %s3229_s20, %s4312_s20   ;;  %s3144_s19 = sphi %s3227_s19, %s4311_s19   ;;  %s3140_s18 = sphi %s3225_s18, %s4310_s18   ;;  %s3136_s17 = sphi %s3223_s17, %s4309_s17  }
   0x9   : > { %s2412_s22 = sadd.s32 4294967294, %s3148_s20   ;;  %p48_p0 = scmp.ne.s32.totalorder %s3140_s18, %s3136_s17 }
   0xa   : > { %p4237_p1 = scmp.eq.s32.totalorder %s3244_s21, 0  ;;  %p288_p3 = scmp.eq.s32.totalorder %s2412_s22, 3 }
   0xb   : > { %p2413_p5 = scmp.ge.s32.totalorder %s3148_s20, 1  ;;  %p295_p7 = scmp.lt.s32.totalorder %s3148_s20, 5 }
   0xc   : > { %p3253_p4 = por %p4237_p1, %p48_p0  ;;  %p3258_p6 = por %p288_p3, %p48_p0 }
   0xd   : > { %p3263_p8 = pnand %p2413_p5, %p295_p7  ;;  %s3150_s26 = smov [#allocation5]  }
   0xe   : > { %s4253_s23 = scalar_select %p3253_p4, 1, 0 }
   0xf   : > { %s4254_s24 = scalar_select %p3258_p6, 1, 0 }
  0x10   : > { %s4256_s25 = scalar_select %p3263_p8, 1, 0 }
  0x11   : > { %4255 = sst [smem:[#allocation13_spill]] %s4254_s24  ;;  %s307_s27 = sshll.u32 %s3150_s26, 4  ;;  %s308_s27 = int_to_ptr.vmem [resolvable:$true] %s307_s27 }
  0x12   : > { %p2733_p9 = pneg %p3263_p8  ;;  %s3151_s29 = smov [#allocation7]  }
  0x13   : > { %s323_s30 = sshll.u32 %s3151_s29, 4  ;;  %s2992_s14 = scalar_lea.hbm %s4226_s1, 4096  ;;  %s3275_s30 = int_to_ptr.vmem [resolvable:$true] %s323_s30 }
  0x14   : > { %p3271_p10 = pnand %p2733_p9, %p4237_p1  ;;  %p2993_p11 = scmp.ne.s32.totalorder %s4226_s1, %s2992_s14 }
  0x15   : > { %p2999_p3 = scmp.lt.u32.totalorder %s2992_s14, %s4226_s1 }
  0x16   : > { %p2994_p12 = pneg %p3271_p10 }
  0x18   : > { %p2995_p13 = pnand %p2994_p12, %p2993_p11 }
  0x1a   : > { %p2996_p0 = pneg %p2995_p13 }
  0x1c   : > { %p3001_p5 = pnand %p2999_p3, %p2996_p0 }
  0x1e   : > { %3004 = shalt.err (!%p3001_p5)
}
  0x1f   : > { %s3005_s29 = scalar_lea.vmem %s308_s27, 4096  ;;  %p3013_p2 = scmp.lt.s32.totalorder %s308_s27, %s308_s27 }
  0x20   : > { %p3006_p7 = scmp.ne.s32.totalorder %s308_s27, %s3005_s29  ;;  %p3014_p6 = scmp.lt.s32.totalorder %s3005_s29, %s3005_s29 }
  0x22   : > { %p3008_p9 = pnand %p3006_p7, %p2994_p12  ;;  %p3015_p4 = por %p3014_p6, %p3013_p2 }
  0x24   : > { %p3009_p1 = pneg %p3008_p9 }
  0x26   : > { %p3016_p8 = pnand %p3015_p4, %p3009_p1 }
  0x28   : > { %3019 = shalt.err (!%p3016_p8)
}
  0x29   : > { %s3152_s12 = smov 256   ;;  %s3153_s13 = smov 16  }
  0x2a   : > { %2736 = dma.hbm_to_vmem [thread:$0]  (!%p3271_p10), %s4226_s1, 4096, %s308_s27, [#allocation6], %s3152_s12, %s3152_s12, %s3153_s13  }
  0x2b   : > { %s3020_s26 = scalar_lea.hbm %s4228_s3, 4096 }
  0x2c   : > { %p3021_p11 = scmp.ne.s32.totalorder %s4228_s3, %s3020_s26  ;;  %p3027_p4 = scmp.lt.u32.totalorder %s3020_s26, %s4228_s3 }
  0x2e   : > { %p3023_p1 = pnand %p3021_p11, %p2994_p12 }
  0x30   : > { %p3024_p2 = pneg %p3023_p1 }
  0x32   : > { %p3029_p6 = pnand %p3027_p4, %p3024_p2 }
  0x34   : > { %3032 = shalt.err (!%p3029_p6)
}
  0x35   : > { %s3033_s27 = scalar_lea.vmem %s3275_s30, 4096  ;;  %p3041_p3 = scmp.lt.s32.totalorder %s3275_s30, %s3275_s30 }
  0x36   : > { %p3034_p8 = scmp.ne.s32.totalorder %s3275_s30, %s3033_s27  ;;  %p3042_p5 = scmp.lt.s32.totalorder %s3033_s27, %s3033_s27 }
  0x38   : > { %p3036_p13 = pnand %p3034_p8, %p2994_p12  ;;  %p3043_p7 = por %p3042_p5, %p3041_p3 }
  0x3a   : > { %p3037_p0 = pneg %p3036_p13 }
  0x3c   : > { %p3044_p9 = pnand %p3043_p7, %p3037_p0 }
  0x3e   : > { %3047 = shalt.err (!%p3044_p9)
}
  0x3f   : > { %s3154_s11 = smov 64   ;;  %s3155_s17 = smov 4  }
  0x40   : > { %2739 = dma.hbm_to_vmem [thread:$0]  (!%p3271_p10), %s4228_s3, 4096, %s3275_s30, [#allocation6], %s3154_s11, %s3154_s11, %s3155_s17  }
  0x41   : > { %s3325_s13 = sadd.s32 1, %s3148_s20   ;;  %s35_s15 = sadd.s32 1, %s3144_s19 }
  0x42   : > { %s32_s14 = ssub.s32 %s3148_s20, %s3325_s13  ;;  %p42_p11 = scmp.ne.s32.totalorder %s3144_s19, %s3140_s18 }
  0x43   : > { %p33_p12 = scmp.eq.s32.totalorder %s32_s14, 0  ;;  %p43_p1 = scmp.eq.s32.totalorder %s3148_s20, 0 }
  0x44   : > { %p4258_p4 = scmp.eq.s32.totalorder %s3244_s21, 3  ;;  %p2750_p8 = scmp.lt.s32.totalorder %s3148_s20, 4 }
  0x45   : > { %s3334_s16 = scalar_select %p33_p12, %s3144_s19, %s35_s15  }
  0x46   : > { %p44_p2 = por %p43_p1, %p42_p11  ;;  %p3338_p6 = por %p4258_p4, %p42_p11 }
  0x47   : > { %s358_s28 = sand.u32 1, %s3144_s19   ;;  %s2516_s30 = sshll.u32 %s3148_s20, 11 }
  0x48   : > { %s2417_s26 = sshll.u32 %s358_s28, 7  ;;  %s3348_s11 = scalar_lea.hbm %s4225_s0, %s2516_s30 }
  0x49   : > { %s362_s17 = scalar_lea.vmem [#allocation2], %s2417_s26  ;;  %p3352_p10 = pnand %p2750_p8, %p44_p2 }
  0x4a   : > { %s369_s24 = sshll.u32 %s362_s17, 4  ;;  %s3356_s14 = scalar_lea.sflag [#allocation3], %s358_s28  ;;  %s3350_s24 = int_to_ptr.vmem [resolvable:$true] %s369_s24 }
  0x4b   : > { %s3048_s15 = scalar_lea.hbm %s3348_s11, 2048  ;;  %p3050_p0 = pneg %p3352_p10 }
  0x4c   : > { %p3049_p13 = scmp.ne.s32.totalorder %s3348_s11, %s3048_s15  ;;  %s3053_s29 = scalar_lea.hbm %s4225_s0, 8192 }
  0x4d   : > { %p3054_p7 = scmp.lt.u32.totalorder %s3348_s11, %s4225_s0  ;;  %p3055_p9 = scmp.lt.u32.totalorder %s3053_s29, %s3048_s15 }
  0x4e   : > { %p3051_p3 = pnand %p3050_p0, %p3049_p13  ;;  %p3057_p11 = scmp.lt.u32.totalorder %s3048_s15, %s3348_s11 }
  0x4f   : > { %p3056_p12 = por %p3055_p9, %p3054_p7 }
  0x50   : > { %p3052_p5 = pneg %p3051_p3 }
  0x51   : > { %p3058_p1 = por %p3057_p11, %p3056_p12 }
  0x53   : > { %p3059_p2 = pnand %p3058_p1, %p3052_p5 }
  0x55   : > { %3062 = shalt.err (!%p3059_p2)
}
  0x56   : > { %s3063_s28 = scalar_lea.vmem %s3350_s24, 2048  ;;  %s3156_s26 = smov [#allocation2]  }
  0x57   : > { %p3064_p4 = scmp.ne.s32.totalorder %s3350_s24, %s3063_s28  ;;  %s3068_s30 = sshll.u32 %s3156_s26, 4  ;;  %s3069_s30 = int_to_ptr.vmem [resolvable:$false] %s3068_s30 }
  0x58   : > { %s3070_s27 = scalar_lea.vmem %s3069_s30, 4096  ;;  %p3071_p3 = scmp.lt.s32.totalorder %s3350_s24, %s3069_s30 }
  0x59   : > { %p3066_p8 = pnand %p3064_p4, %p3050_p0  ;;  %p3072_p7 = scmp.lt.s32.totalorder %s3070_s27, %s3063_s28 }
  0x5b   : > { %p3067_p13 = pneg %p3066_p8  ;;  %p3073_p9 = por %p3072_p7, %p3071_p3 }
  0x5d   : > { %p3074_p12 = pnand %p3073_p9, %p3067_p13 }
  0x5f   : > { %3077 = shalt.err (!%p3074_p12)
}
  0x60   : > { %s3157_s15 = smov 128   ;;  %s3158_s29 = smov 8  }
  0x61   : > { %2743 = dma.hbm_to_vmem [thread:$0]  (!%p3352_p10), %s3348_s11, 2048, %s3350_s24, %s3356_s14, %s3157_s15, %s3157_s15, %s3158_s29  }
  0x62   : > { %p4261_p0 = scmp.ne.s32.totalorder %s4256_s25, 0 }
  0x64   : > { %381 = sbr.rel (%p4261_p0) target bundleno = 963 (0x3c3), region = 64 }
  0x6b   : > { %s3387_s17 = sand.u32 1, %s3140_s18   ;;  %p4262_p5 = scmp.ne.s32.totalorder %s4253_s23, 0 }
  0x6c   : > { %s2421_s28 = sshll.u32 %s3387_s17, 7  ;;  %s384_s26 = scalar_lea.sflag [#allocation3], %s3387_s17 }
  0x6d   : > { %s3393_s30 = scalar_lea.vmem [#allocation2], %s2421_s28 }
  0x6e   : > { %3123 = dma.done.wait (%p4262_p5), %s384_s26, 2048  }
  0x6f   : > { %3125 = vsyncadd (%p4262_p5), %s384_s26, 4294965248  ;;  %p4263_p10 = scmp.eq.s32.totalorder %s3244_s21, 0 }
  0x71   : > { %3127 = dma.done.wait (%p4263_p10), [#allocation6], 8192   ;;  %p4264_p11 = pmov %p4263_p10 }
  0x72   : > { %v3159_v0 = vmov 0   ;;  %v2797_v1 = vld [vmem:[#allocation5 + $0x4] ss:$16 sps:$4 sm:$0xff]   ;;  %v2799_v2 = vld [vmem:[#allocation5] ss:$16 sps:$4 sm:$0xff]   ;;  %v3414_v32 = vld [vmem:[%s3393_s30 + $0x8] sm:$0xff] }
  0x73   : > { %3129 = vsyncadd (%p4264_p11), [#allocation6], 4294959104  ;;  %711 = vmatprep.mubr.bf16.mxu0 %v3159_v0  ;;  %824 = vmatprep.mubr.bf16.mxu1 %v3159_v0  ;;  %v2800_v3 = vld [vmem:[#allocation5 + $0xc] ss:$16 sps:$4 sm:$0xff]   ;;  %v2802_v4 = vld [vmem:[#allocation5 + $0x8] ss:$16 sps:$4 sm:$0xff]   ;;  %v1732_v37 = vmul.f32 %v3414_v32, %v3414_v32 }
  0x74   : > { %679 = vmatprep.subr.bf16.mxu0 %v2797_v1  ;;  %v2803_v5 = vld [vmem:[#allocation5 + $0x24] ss:$16 sps:$4 sm:$0xff]   ;;  %v2805_v6 = vld [vmem:[#allocation5 + $0x20] ss:$16 sps:$4 sm:$0xff]   ;;  %792 = vmatprep.subr.bf16.mxu1 %v2800_v3  ;;  %v2806_v7 = vld [vmem:[#allocation5 + $0x2c] ss:$16 sps:$4 sm:$0xff]  }
  0x75   : > { %680 = vmatpush1.bf16.msra.mxu0 %v2799_v2  ;;  %793 = vmatpush1.bf16.msra.mxu1 %v2802_v4  ;;  %v2808_v8 = vld [vmem:[#allocation5 + $0x28] ss:$16 sps:$4 sm:$0xff]   ;;  %v2809_v9 = vld [vmem:[#allocation5 + $0x44] ss:$16 sps:$4 sm:$0xff]   ;;  %v2811_v10 = vld [vmem:[#allocation5 + $0x40] ss:$16 sps:$4 sm:$0xff]  }
  0x76   : > { %681 = vmatprep.subr.bf16.mxu0 %v2803_v5  ;;  %794 = vmatprep.subr.bf16.mxu1 %v2806_v7  ;;  %v2812_v11 = vld [vmem:[#allocation5 + $0x4c] ss:$16 sps:$4 sm:$0xff]   ;;  %v2815_v12 = vld [vmem:[#allocation5 + $0x64] ss:$16 sps:$4 sm:$0xff]   ;;  %v2814_v13 = vld [vmem:[#allocation5 + $0x48] ss:$16 sps:$4 sm:$0xff]  }
  0x77   : > { %v2818_v14 = vld [vmem:[#allocation5 + $0x6c] ss:$16 sps:$4 sm:$0xff]   ;;  %v2817_v15 = vld [vmem:[#allocation5 + $0x60] ss:$16 sps:$4 sm:$0xff]   ;;  %v2821_v16 = vld [vmem:[#allocation5 + $0x84] ss:$16 sps:$4 sm:$0xff]  }
  0x78   : > { %v2820_v17 = vld [vmem:[#allocation5 + $0x68] ss:$16 sps:$4 sm:$0xff]   ;;  %v2824_v18 = vld [vmem:[#allocation5 + $0x8c] ss:$16 sps:$4 sm:$0xff]   ;;  %v2823_v19 = vld [vmem:[#allocation5 + $0x80] ss:$16 sps:$4 sm:$0xff]  }
  0x79   : > { %682 = vmatpush1.bf16.msra.mxu0 %v2805_v6  ;;  %795 = vmatpush1.bf16.msra.mxu1 %v2808_v8  ;;  %v2827_v20 = vld [vmem:[#allocation5 + $0xa4] ss:$16 sps:$4 sm:$0xff]   ;;  %v2826_v21 = vld [vmem:[#allocation5 + $0x88] ss:$16 sps:$4 sm:$0xff]   ;;  %v2830_v22 = vld [vmem:[#allocation5 + $0xac] ss:$16 sps:$4 sm:$0xff]  }
  0x7a   : > { %683 = vmatprep.subr.bf16.mxu0 %v2809_v9  ;;  %796 = vmatprep.subr.bf16.mxu1 %v2812_v11  ;;  %v2829_v23 = vld [vmem:[#allocation5 + $0xa0] ss:$16 sps:$4 sm:$0xff]   ;;  %v2833_v24 = vld [vmem:[#allocation5 + $0xc4] ss:$16 sps:$4 sm:$0xff]   ;;  %v2832_v25 = vld [vmem:[#allocation5 + $0xa8] ss:$16 sps:$4 sm:$0xff]  }
  0x7b   : > { %v3406_v26 = vld [vmem:[%s3393_s30] sm:$0xff]  ;;  %v2836_v27 = vld [vmem:[#allocation5 + $0xcc] ss:$16 sps:$4 sm:$0xff]   ;;  %v3409_v28 = vld [vmem:[%s3393_s30 + $0x10] sm:$0xff]  ;;  %vm2152_vm0 = vcmask 130048   ;;  %s4143_s24 = scalar_lea.vmem [#allocation8], %s2421_s28 }
  0x7c   : > { %1682 = vadd.xlane.f32.xlu0 %v3406_v26  ;;  %v2835_v29 = vld [vmem:[#allocation5 + $0xc0] ss:$16 sps:$4 sm:$0xff]   ;;  %1686 = vadd.xlane.f32.xlu1 %v3409_v28  ;;  %v2839_v30 = vld [vmem:[#allocation5 + $0xe4] ss:$16 sps:$4 sm:$0xff]   ;;  %v2838_v31 = vld [vmem:[#allocation5 + $0xc8] ss:$16 sps:$4 sm:$0xff]   ;;  %v1731_v35 = vmul.f32 %v3406_v26, %v3406_v26  ;;  %v457_v40 = vpack.c.bf16 %v3414_v32, %v3406_v26  ;;  %v1733_v41 = vmul.f32 %v3409_v28, %v3409_v28 }
  0x7d   : > { %684 = vmatpush1.bf16.msra.mxu0 %v2811_v10  ;;  %797 = vmatpush1.bf16.msra.mxu1 %v2814_v13  ;;  %v2842_v33 = vld [vmem:[#allocation5 + $0xec] ss:$16 sps:$4 sm:$0xff]   ;;  %v2841_v36 = vld [vmem:[#allocation5 + $0xe0] ss:$16 sps:$4 sm:$0xff]   ;;  %v2844_v39 = vld [vmem:[#allocation5 + $0xe8] ss:$16 sps:$4 sm:$0xff]  }
  0x7e   : > { %685 = vmatprep.subr.bf16.mxu0 %v2815_v12  ;;  %798 = vmatprep.subr.bf16.mxu1 %v2818_v14  ;;  %v3417_v34 = vld [vmem:[%s3393_s30 + $0x18] sm:$0xff]  ;;  %v2845_v38 = vld [vmem:[#allocation7 + $0x40] sm:$0xff]   ;;  %v2847_v44 = vld [vmem:[#allocation7 + $0x48] sm:$0xff]   ;;  %s2517_s28 = sshll.u32 %s3244_s21, 11  ;;  %s2320_s12 = sshll.u32 %s4143_s24, 4  ;;  %s4178_s12 = int_to_ptr.vmem [resolvable:$true] %s2320_s12 }
  0x7f   : > { %v1734_v42 = vmul.f32 %v3417_v34, %v3417_v34  ;;  %v2846_v43 = vld [vmem:[#allocation7] sm:$0xff]   ;;  %v2848_v45 = vld [vmem:[#allocation7 + $0x8] sm:$0xff]   ;;  %v2849_v47 = vld [vmem:[#allocation7 + $0x50] sm:$0xff]   ;;  %v458_v49 = vpack.c.bf16 %v3417_v34, %v3409_v28  ;;  %s4305_s27 = sld [smem:[#allocation25_spill]]  ;;  %s2307_s21 = scalar_lea.sflag [#allocation4], %s3387_s17 }
  0x80   : > { %1684 = vadd.xlane.f32.xlu0 %v3414_v32  ;;  %1688 = vadd.xlane.f32.xlu1 %v3417_v34  ;;  %v3433_v46 = vld [vmem:[%s3393_s30 + $0x20] sm:$0xff]  ;;  %v3436_v48 = vld [vmem:[%s3393_s30 + $0x28] sm:$0xff]  ;;  %v2850_v50 = vld [vmem:[#allocation7 + $0x10] sm:$0xff]   ;;  %s3078_s29 = scalar_lea.vmem %s4178_s12, 2048  ;;  %s3160_s26 = smov [#allocation8]  }
  0x81   : > { %686 = vmatpush1.bf16.msra.mxu0 %v2817_v15  ;;  %799 = vmatpush1.bf16.msra.mxu1 %v2820_v17  ;;  %v3443_v51 = vld [vmem:[%s3393_s30 + $0x30] sm:$0xff]  ;;  %v2851_v52 = vld [vmem:[#allocation7 + $0x58] sm:$0xff]   ;;  %v1735_v54 = vmul.f32 %v3433_v46, %v3433_v46  ;;  %v1736_v56 = vmul.f32 %v3436_v48, %v3436_v48  ;;  %v459_v57 = vpack.c.bf16 %v3436_v48, %v3433_v46  ;;  %v449_v60 = vld [vmem:[%s3393_s30 + $0x40] sm:$0xff]  ;;  %p3079_p1 = scmp.ne.s32.totalorder %s4178_s12, %s3078_s29  ;;  %s3082_s23 = sshll.u32 %s3160_s26, 4  ;;  %s3083_s23 = int_to_ptr.vmem [resolvable:$false] %s3082_s23 }
  0x82   : > { %687 = vmatprep.subr.bf16.mxu0 %v2821_v16  ;;  %800 = vmatprep.subr.bf16.mxu1 %v2824_v18  ;;  %4265 = vst [vmem:[#allocation14_spill] sm:$0xff] %v3443_v51  ;;  %v3447_v53 = vld [vmem:[%s3393_s30 + $0x38] sm:$0xff]  ;;  %v1737_v58 = vmul.f32 %v3443_v51, %v3443_v51  ;;  %v450_v61 = vld [vmem:[%s3393_s30 + $0x48] sm:$0xff]  ;;  %v451_v63 = vld [vmem:[%s3393_s30 + $0x50] sm:$0xff]  ;;  %v1739_v2 = vmul.f32 %v449_v60, %v449_v60  ;;  %s3084_s25 = scalar_lea.vmem %s3083_s23, 4096  ;;  %p3085_p8 = scmp.lt.s32.totalorder %s4178_s12, %s3083_s23 }
  0x83   : > { %4266 = vst [vmem:[#allocation15_spill] sm:$0xff] %v3447_v53  ;;  %v2852_v55 = vld [vmem:[#allocation7 + $0x18] sm:$0xff]   ;;  %v1738_v59 = vmul.f32 %v3447_v53, %v3447_v53  ;;  %v460_v62 = vpack.c.bf16 %v3447_v53, %v3443_v51  ;;  %v1740_v3 = vmul.f32 %v450_v61, %v450_v61  ;;  %v461_v4 = vpack.c.bf16 %v450_v61, %v449_v60  ;;  %v453_v7 = vld [vmem:[%s3393_s30 + $0x60] sm:$0xff]  ;;  %v454_v9 = vld [vmem:[%s3393_s30 + $0x68] sm:$0xff]  ;;  %p3080_p2 = pnand %p3079_p1, %p3338_p6  ;;  %p3086_p13 = scmp.lt.s32.totalorder %s3084_s25, %s3078_s29 }
  0x84   : > { %1747 = vadd.xlane.f32.xlu0 %v1731_v35  ;;  %1749 = vadd.xlane.f32.xlu1 %v1732_v37  ;;  %v452_v1 = vld [vmem:[%s3393_s30 + $0x58] sm:$0xff]  ;;  %v1741_v5 = vmul.f32 %v451_v63, %v451_v63  ;;  %v455_v10 = vld [vmem:[%s3393_s30 + $0x70] sm:$0xff]  ;;  %v1743_v12 = vmul.f32 %v453_v7, %v453_v7  ;;  %v1744_v13 = vmul.f32 %v454_v9, %v454_v9  ;;  %v2855_v18 = vld [vmem:[#allocation7 + $0xc0] sm:$0xff]  }
  0x85   : > { %688 = vmatpush1.bf16.msra.mxu0 %v2823_v19  ;;  %801 = vmatpush1.bf16.msra.mxu1 %v2826_v21  ;;  %v1742_v6 = vmul.f32 %v452_v1, %v452_v1  ;;  %v462_v8 = vpack.c.bf16 %v452_v1, %v451_v63  ;;  %v456_v11 = vld [vmem:[%s3393_s30 + $0x78] sm:$0xff]  ;;  %v463_v14 = vpack.c.bf16 %v454_v9, %v453_v7  ;;  %v2856_v19 = vld [vmem:[#allocation7 + $0x80] sm:$0xff]   ;;  %v2859_v21 = vld [vmem:[#allocation7 + $0x88] sm:$0xff]   ;;  %s4176_s15 = scalar_lea.hbm %s4305_s27, %s2517_s28  ;;  %p3081_p4 = pneg %p3080_p2 }
  0x86   : > { %689 = vmatprep.subr.bf16.mxu0 %v2827_v20  ;;  %802 = vmatprep.subr.bf16.mxu1 %v2830_v22  ;;  %v1745_v15 = vmul.f32 %v455_v10, %v455_v10  ;;  %v1746_v16 = vmul.f32 %v456_v11, %v456_v11  ;;  %v464_v17 = vpack.c.bf16 %v456_v11, %v455_v10  ;;  %v2857_v20 = vld [vmem:[#allocation7 + $0xc8] sm:$0xff]   ;;  %v2861_v22 = vld [vmem:[#allocation7 + $0xd0] sm:$0xff]   ;;  %p3087_p3 = por %p3086_p13, %p3085_p8 }
  0x87   : > { %v2864_v35 = vld [vmem:[#allocation7 + $0x70] sm:$0xff]  }
  0x88   : > { %1751 = vadd.xlane.f32.xlu0 %v1733_v41  ;;  %1753 = vadd.xlane.f32.xlu1 %v1734_v42  ;;  %v2866_v37 = vld [vmem:[#allocation7 + $0x30] sm:$0xff]   ;;  %v2870_v41 = vld [vmem:[#allocation7 + $0x78] sm:$0xff]   ;;  %p3088_p7 = pnand %p3087_p3, %p3081_p4 }
  0x89   : > { %690 = vmatpush1.bf16.msra.mxu0 %v2829_v23  ;;  %803 = vmatpush1.bf16.msra.mxu1 %v2832_v25  ;;  %v2862_v23 = vld [vmem:[#allocation7 + $0x90] sm:$0xff]   ;;  %v2865_v25 = vld [vmem:[#allocation7 + $0x98] sm:$0xff]  }
  0x8a   : > { %691 = vmatprep.subr.bf16.mxu0 %v2833_v24  ;;  %804 = vmatprep.subr.bf16.mxu1 %v2836_v27  ;;  %v2863_v24 = vld [vmem:[#allocation7 + $0xd8] sm:$0xff]   ;;  %v2853_v27 = vld [vmem:[#allocation7 + $0x60] sm:$0xff]  }
  0x8b   : > { %v2872_v42 = vld [vmem:[#allocation7 + $0x38] sm:$0xff]  }
  0x8c   : > { %1690 = vadd.xlane.f32.xlu0 %v3433_v46  ;;  %1692 = vadd.xlane.f32.xlu1 %v3436_v48 }
  0x8d   : > { %692 = vmatpush1.bf16.msra.mxu0 %v2835_v29  ;;  %805 = vmatpush1.bf16.msra.mxu1 %v2838_v31  ;;  %v2854_v29 = vld [vmem:[#allocation7 + $0x20] sm:$0xff]   ;;  %v2860_v31 = vld [vmem:[#allocation7 + $0x28] sm:$0xff]  }
  0x8e   : > { %693 = vmatprep.subr.bf16.mxu0 %v2839_v30  ;;  %806 = vmatprep.subr.bf16.mxu1 %v2842_v33  ;;  %v2867_v30 = vld [vmem:[#allocation7 + $0xe0] sm:$0xff]  }
  0x8f   : > { %v2868_v33 = vld [vmem:[#allocation7 + $0xa0] sm:$0xff]  }
  0x90   : > { %1694 = vadd.xlane.f32.xlu0 %v3443_v51  ;;  %1696 = vadd.xlane.f32.xlu1 %v3447_v53 }
  0x91   : > { %694 = vmatpush1.bf16.msra.mxu0 %v2841_v36  ;;  %807 = vmatpush1.bf16.msra.mxu1 %v2844_v39  ;;  %v2869_v36 = vld [vmem:[#allocation7 + $0xe8] sm:$0xff]   ;;  %v2873_v39 = vld [vmem:[#allocation7 + $0xf0] sm:$0xff]  }
  0x92   : > { %2518 = vmatprep.subr.bf16.mxu0 %v2845_v38  ;;  %2582 = vmatprep.subr.bf16.mxu1 %v2855_v18  ;;  %v2871_v38 = vld [vmem:[#allocation7 + $0xa8] sm:$0xff]  }
  0x94   : > { %712 = vmatmul.mubr.bf16.vlgmr.msra.gmra.mrb[0].mxu0 %v457_v40  ;;  %825 = vmatmul.mubr.bf16.vlgmr.msra.gmra.mrb[0].mxu1 %v457_v40  ;;  %v2874_v40 = vld [vmem:[#allocation7 + $0xb0] sm:$0xff]  }
  0x95   : > { %721 = vmatprep.mubr.bf16.mxu0 %v3159_v0  ;;  %2519 = vmatpush3.bf16.msra.mxu0 %v2846_v43  ;;  %v2875_v43 = vld [vmem:[#allocation7 + $0xf8] sm:$0xff]  }
  0x96   : > { %834 = vmatprep.mubr.bf16.mxu1 %v3159_v0  ;;  %2520 = vmatprep.subr.bf16.mxu0 %v2847_v44  ;;  %v2876_v44 = vld [vmem:[#allocation7 + $0xb8] sm:$0xff]  }
  0x97   : > { %1755 = vadd.xlane.f32.xlu0 %v1735_v54  ;;  %1757 = vadd.xlane.f32.xlu1 %v1736_v56 }
  0x98   : > { %2583 = vmatpush3.bf16.msra.mxu1 %v2856_v19 }
  0x99   : > { %2521 = vmatpush3.bf16.msra.mxu0 %v2848_v45  ;;  %2584 = vmatprep.subr.bf16.mxu1 %v2857_v20  ;;  %v3486_v45 = vld [vmem:[%s4232_s7] sm:$0xff]  }
  0x9a   : > { %2522 = vmatprep.subr.bf16.mxu0 %v2849_v47 }
  0x9b   : > { %1759 = vadd.xlane.f32.xlu0 %v1737_v58  ;;  %1761 = vadd.xlane.f32.xlu1 %v1738_v59 }
  0x9c   : > { %722 = vmatmul.mubr.bf16.gmra.mrb[4].mxu0 %v458_v49  ;;  %835 = vmatmul.mubr.bf16.gmra.mrb[4].mxu1 %v458_v49 }
  0x9d   : > { %731 = vmatprep.mubr.bf16.mxu0 %v3159_v0  ;;  %2523 = vmatpush3.bf16.msra.mxu0 %v2850_v50 }
  0x9e   : > { %844 = vmatprep.mubr.bf16.mxu1 %v3159_v0  ;;  %2524 = vmatprep.subr.bf16.mxu0 %v2851_v52 }
  0x9f   : > { %1698 = vadd.xlane.f32.xlu0 %v449_v60  ;;  %1700 = vadd.xlane.f32.xlu1 %v450_v61 }
  0xa0   : > { %2585 = vmatpush3.bf16.msra.mxu1 %v2859_v21 }
  0xa1   : > { %2525 = vmatpush3.bf16.msra.mxu0 %v2852_v55  ;;  %2586 = vmatprep.subr.bf16.mxu1 %v2861_v22 }
  0xa2   : > { %2526 = vmatprep.subr.bf16.mxu0 %v2853_v27 }
  0xa3   : > { %1702 = vadd.xlane.f32.xlu0 %v451_v63  ;;  %1704 = vadd.xlane.f32.xlu1 %v452_v1 }
  0xa4   : > { %732 = vmatmul.mubr.bf16.gmra.mrb[8].mxu0 %v459_v57  ;;  %845 = vmatmul.mubr.bf16.gmra.mrb[8].mxu1 %v459_v57 }
  0xa5   : > { %741 = vmatprep.mubr.bf16.mxu0 %v3159_v0  ;;  %854 = vmatprep.mubr.bf16.mxu1 %v3159_v0 }
  0xa6   : > { %2587 = vmatpush3.bf16.msra.mxu1 %v2862_v23  ;;  %2527 = vmatpush3.bf16.msra.mxu0 %v2854_v29 }
  0xa7   : > { %1763 = vadd.xlane.f32.xlu0 %v1739_v2  ;;  %1765 = vadd.xlane.f32.xlu1 %v1740_v3 }
  0xa8   : > { %2588 = vmatprep.subr.bf16.mxu1 %v2863_v24 }
  0xaa   : > { %2589 = vmatpush3.bf16.msra.mxu1 %v2865_v25 }
  0xab   : > { %1767 = vadd.xlane.f32.xlu0 %v1741_v5  ;;  %1769 = vadd.xlane.f32.xlu1 %v1742_v6 }
  0xac   : > { %742 = vmatmul.mubr.bf16.gmra.mrb[12].mxu0 %v460_v62  ;;  %855 = vmatmul.mubr.bf16.gmra.mrb[12].mxu1 %v460_v62 }
  0xad   : > { %751 = vmatprep.mubr.bf16.mxu0 %v3159_v0  ;;  %864 = vmatprep.mubr.bf16.mxu1 %v3159_v0 }
  0xae   : > { %2590 = vmatprep.subr.bf16.mxu1 %v2867_v30 }
  0xaf   : > { %1706 = vadd.xlane.f32.xlu0 %v453_v7  ;;  %1708 = vadd.xlane.f32.xlu1 %v454_v9 }
  0xb0   : > { %2591 = vmatpush3.bf16.msra.mxu1 %v2868_v33 }
  0xb1   : > { %2592 = vmatprep.subr.bf16.mxu1 %v2869_v36 }
  0xb3   : > { %1710 = vadd.xlane.f32.xlu0 %v455_v10  ;;  %1712 = vadd.xlane.f32.xlu1 %v456_v11 }
  0xb4   : > { %752 = vmatmul.mubr.bf16.gmra.mrb[16].mxu0 %v461_v4  ;;  %865 = vmatmul.mubr.bf16.gmra.mrb[16].mxu1 %v461_v4 }
  0xb5   : > { %761 = vmatprep.mubr.bf16.mxu0 %v3159_v0  ;;  %874 = vmatprep.mubr.bf16.mxu1 %v3159_v0 }
  0xb6   : > { %2593 = vmatpush3.bf16.msra.mxu1 %v2871_v38 }
  0xb7   : > { %1771 = vadd.xlane.f32.xlu0 %v1743_v12  ;;  %1773 = vadd.xlane.f32.xlu1 %v1744_v13 }
  0xb8   : > { %2594 = vmatprep.subr.bf16.mxu1 %v2873_v39 }
  0xba   : > { %2595 = vmatpush3.bf16.msra.mxu1 %v2874_v40 }
  0xbb   : > { %1775 = vadd.xlane.f32.xlu0 %v1745_v15  ;;  %1777 = vadd.xlane.f32.xlu1 %v1746_v16 }
  0xbc   : > { %762 = vmatmul.mubr.bf16.gmra.mrb[20].mxu0 %v462_v8  ;;  %875 = vmatmul.mubr.bf16.gmra.mrb[20].mxu1 %v462_v8 }
  0xbd   : > { %771 = vmatprep.mubr.bf16.mxu0 %v3159_v0  ;;  %884 = vmatprep.mubr.bf16.mxu1 %v3159_v0 }
  0xbe   : > { %2596 = vmatprep.subr.bf16.mxu1 %v2875_v43 }
  0xbf   : > { %2597 = vmatpush3.bf16.msra.mxu1 %v2876_v44 }
  0xc4   : > { %772 = vmatmul.mubr.bf16.gmra.mrb[24].mxu0 %v463_v14  ;;  %885 = vmatmul.mubr.bf16.gmra.mrb[24].mxu1 %v463_v14  ;;  %v499_v14 = vlaneseq }
  0xc5   : > { %781 = vmatprep.mubr.bf16.mxu0 %v3159_v0  ;;  %894 = vmatprep.mubr.bf16.mxu1 %v3159_v0  ;;  %v2858_v0 = vld [vmem:[#allocation7 + $0x68] sm:$0xff]  }
  0xc6   : > { %2528 = vmatprep.subr.bf16.mxu0 %v2858_v0  ;;  %v500_v18 = vshrl.u32 %v499_v14, 7 }
  0xc7   : > { %2529 = vmatpush3.bf16.msra.mxu0 %v2860_v31  ;;  %v497_v31 = vld [vmem:[%s4227_s2] sm:$0xf] }
  0xc8   : > { %2530 = vmatprep.subr.bf16.mxu0 %v2864_v35  ;;  %v501_v29 = vsub.s32 0, %v500_v18  ;;  %v505_v43 = vsub.s32 1, %v500_v18  ;;  %v509_v44 = vsub.s32 2, %v500_v18 }
  0xcb   : > { %2531 = vmatpush3.bf16.msra.mxu0 %v2866_v37 }
  0xcc   : > { %782 = vmatmul.mubr.bf16.gmra.mrb[28].mxu0 %v464_v17  ;;  %895 = vmatmul.mubr.bf16.gmra.mrb[28].mxu1 %v464_v17 }
  0xcd   : > { %2532 = vmatprep.subr.bf16.mxu0 %v2870_v41 }
  0xcf   : > { %2533 = vmatpush3.bf16.msra.mxu0 %v2872_v42 }
  0xd0   : > { %2671 = vmatprep.subr.bf16.mxu0 %v3486_v45 }
 0x109   : > { %v1683_v47 = vpop.xlane.xlu0 %1682  ;;  %v1687_v49 = vpop.xlane.xlu1 %1686 }
 0x10a   : > { %v1715_v55 = vmul.f32 0.0078125, %v1683_v47  ;;  %v3489_v63 = vmul.f32 0.0078125, %v1687_v49  ;;  %v513_v47 = vsub.s32 3, %v500_v18  ;;  %v2490_v49 = vld [vmem:[%s4230_s5] ss:$0 sm:$0xff] }
 0x10c   : > { %v1795_v59 = vmul.f32 %v1715_v55, %v1715_v55  ;;  %v1797_v5 = vmul.f32 %v3489_v63, %v3489_v63  ;;  %v1827_v24 = vsub.f32 %v3406_v26, %v1715_v55 }
 0x10d   : > { %v1685_v50 = vpop.xlane.xlu0 %1684  ;;  %v1689_v52 = vpop.xlane.xlu1 %1688 }
 0x10e   : > { %v1716_v58 = vmul.f32 0.0078125, %v1685_v50  ;;  %v3493_v15 = vmul.f32 0.0078125, %v1689_v52  ;;  %v3519_v50 = vrot.slane %v497_v31, %v501_v29 }
 0x110   : > { %v1796_v1 = vmul.f32 %v1716_v58, %v1716_v58  ;;  %v1798_v19 = vmul.f32 %v3493_v15, %v3493_v15  ;;  %v1828_v0 = vsub.f32 %v3414_v32, %v1716_v58 }
 0x111   : > { %v1748_v54 = vpop.xlane.xlu0 %1747  ;;  %v1750_v56 = vpop.xlane.xlu1 %1749 }
 0x112   : > { %v1779_v60 = vmul.f32 0.0078125, %v1748_v54  ;;  %v1780_v2 = vmul.f32 0.0078125, %v1750_v56  ;;  %v1829_v54 = vsub.f32 %v3409_v28, %v3489_v63  ;;  %v2491_v63 = vld [vmem:[%s4231_s6] ss:$0 sm:$0xff] }
 0x114   : > { %v1811_v3 = vsub.f32 %v1779_v60, %v1795_v59  ;;  %v1812_v6 = vsub.f32 %v1780_v2, %v1796_v1  ;;  %v3525_v1 = vrot.slane %v497_v31, %v505_v43  ;;  %v3527_v2 = vrot.slane %v497_v31, %v509_v44 }
 0x115   : > { %v1752_v57 = vpop.xlane.xlu0 %1751  ;;  %v1754_v62 = vpop.xlane.xlu1 %1753 }
 0x116   : > { %v1781_v7 = vmul.f32 0.0078125, %v1752_v57  ;;  %v1843_v9 = vadd.f32 1e-05, %v1811_v3  ;;  %v1844_v10 = vadd.f32 1e-05, %v1812_v6  ;;  %v1782_v20 = vmul.f32 0.0078125, %v1754_v62 }
 0x117   : > { %v3529_v3 = vrot.slane %v497_v31, %v513_v47 }
 0x118   : > { %v1813_v11 = vsub.f32 %v1781_v7, %v1797_v5  ;;  %2886 = vrsqrt.f32 %v1843_v9  ;;  %v1814_v30 = vsub.f32 %v1782_v20, %v1798_v19 }
 0x119   : > { %v1691_v61 = vpop.xlane.xlu0 %1690  ;;  %v1693_v4 = vpop.xlane.xlu1 %1692  ;;  %2888 = vrsqrt.f32 %v1844_v10 }
 0x11a   : > { %v1845_v16 = vadd.f32 1e-05, %v1813_v11  ;;  %v3497_v22 = vmul.f32 0.0078125, %v1693_v4  ;;  %v3499_v23 = vmul.f32 0.0078125, %v1691_v61  ;;  %v1846_v52 = vadd.f32 1e-05, %v1814_v30 }
 0x11c   : > { %2890 = vrsqrt.f32 %v1845_v16  ;;  %v1800_v33 = vmul.f32 %v3497_v22, %v3497_v22  ;;  %v1799_v35 = vmul.f32 %v3499_v23, %v3499_v23 }
 0x11d   : > { %v1695_v8 = vpop.xlane.xlu0 %1694  ;;  %v1697_v12 = vpop.xlane.xlu1 %1696  ;;  %2892 = vrsqrt.f32 %v1846_v52 }
 0x11e   : > { %v3502_v25 = vmul.f32 0.0078125, %v1695_v8  ;;  %v3512_v36 = vmul.f32 0.0078125, %v1697_v12 }
 0x120   : > { %4267 = vst [vmem:[#allocation16_spill] sm:$0xff] %v3502_v25  ;;  %4268 = vst [vmem:[#allocation17_spill] sm:$0xff] %v3512_v36  ;;  %v1801_v39 = vmul.f32 %v3502_v25, %v3502_v25  ;;  %v1802_v55 = vmul.f32 %v3512_v36, %v3512_v36 }
 0x122   : > { %v2887_v27 = vpop.eup %2886 }
 0x123   : > { %v2889_v38 = vpop.eup %2888  ;;  %v1875_v42 = vmul.f32 %v2887_v27, %v1827_v24 }
 0x124   : > { %v1756_v13 = vpop.xlane.xlu0 %1755  ;;  %v1758_v17 = vpop.xlane.xlu1 %1757  ;;  %v1876_v57 = vmul.f32 %v2889_v38, %v1828_v0 }
 0x125   : > { %v1783_v26 = vmul.f32 0.0078125, %v1756_v13  ;;  %v1784_v32 = vmul.f32 0.0078125, %v1758_v17  ;;  %v1898_v62 = vmul.f32 %v2490_v49, %v1875_v42 }
 0x126   : > { %v2891_v58 = vpop.eup %2890  ;;  %v3546_v14 = vmul.f32 %v2490_v49, %v1876_v57 }
 0x127   : > { %v1815_v56 = vsub.f32 %v1783_v26, %v1799_v35  ;;  %v1816_v59 = vsub.f32 %v1784_v32, %v1800_v33  ;;  %v3542_v11 = vmul.f32 %v2891_v58, %v1829_v54 }
 0x128   : > { %v1760_v21 = vpop.xlane.xlu0 %1759  ;;  %v1762_v37 = vpop.xlane.xlu1 %1761 }
 0x129   : > { %v1785_v40 = vmul.f32 0.0078125, %v1760_v21  ;;  %v1786_v60 = vmul.f32 0.0078125, %v1762_v37  ;;  %4269 = vst [vmem:[#allocation18_spill] sm:$0xff] %v3542_v11  ;;  %v1847_v13 = vadd.f32 1e-05, %v1815_v56  ;;  %v3548_v21 = vadd.f32 %v2491_v63, %v1898_v62 }
 0x12a   : > { %v1848_v18 = vadd.f32 1e-05, %v1816_v59 }
 0x12b   : > { %v1817_v61 = vsub.f32 %v1785_v40, %v1801_v39  ;;  %v1818_v19 = vsub.f32 %v1786_v60, %v1802_v55  ;;  %4270 = vst [vmem:[#allocation19_spill] sm:$0xff] %v3548_v21  ;;  %2894 = vrsqrt.f32 %v1847_v13 }
 0x12c   : > { %v1699_v41 = vpop.xlane.xlu0 %1698  ;;  %v1701_v28 = vpop.xlane.xlu1 %1700  ;;  %2896 = vrsqrt.f32 %v1848_v18 }
 0x12d   : > { %v1849_v20 = vadd.f32 1e-05, %v1817_v61  ;;  %v3553_v31 = vmul.f32 0.0078125, %v1699_v41  ;;  %v3558_v38 = vmul.f32 0.0078125, %v1701_v28  ;;  %v3568_v44 = vadd.f32 1e-05, %v1818_v19 }
 0x12f   : > { %4271 = vst [vmem:[#allocation20_spill] sm:$0xff] %v3553_v31  ;;  %4272 = vst [vmem:[#allocation21_spill] sm:$0xff] %v3558_v38  ;;  %2898 = vrsqrt.f32 %v1849_v20  ;;  %v3575_v55 = vmul.f32 %v3553_v31, %v3553_v31  ;;  %v3582_v59 = vmul.f32 %v3558_v38, %v3558_v38 }
 0x130   : > { %v1703_v9 = vpop.xlane.xlu0 %1702  ;;  %v1705_v47 = vpop.xlane.xlu1 %1704 }
 0x131   : > { %v3563_v42 = vmul.f32 0.0078125, %v1703_v9  ;;  %v3584_v60 = vmul.f32 0.0078125, %v1705_v47  ;;  %v3594_v9 = vpop.eup %2892 }
 0x133   : > { %4273 = vst [vmem:[#allocation22_spill] sm:$0xff] %v3563_v42  ;;  %4274 = vst [vmem:[#allocation23_spill] sm:$0xff] %v3584_v60  ;;  %v3590_v63 = vmul.f32 %v3563_v42, %v3563_v42 }
 0x134   : > { %v1764_v49 = vpop.xlane.xlu0 %1763 }
 0x167   : > { %v713_v5 = vpop.f32.mrb[0].mxu0  ;;  %v826_v17 = vpop.f32.mrb[0].mxu1 }
 0x168   : > { %v715_v10 = vpop.f32.mrb[1].mxu0  ;;  %v714_v24 = vadd.f32 %v713_v5, %v3519_v50  ;;  %v827_v29 = vadd.f32 %v826_v17, %v3527_v2  ;;  %v828_v30 = vpop.f32.mrb[1].mxu1  ;;  %v3592_v5 = vmul.f32 0.0078125, %v1764_v49 }
 0x169   : > { %v717_v16 = vpop.f32.mrb[2].mxu0  ;;  %v716_v33 = vadd.f32 %v715_v10, %v3525_v1  ;;  %v829_v26 = vadd.f32 %v828_v30, %v3529_v3  ;;  %v830_v37 = vpop.f32.mrb[2].mxu1 }
 0x16a   : > { %v718_v27 = vadd.f32 %v717_v16, %v3519_v50  ;;  %v719_v0 = vpop.f32.mrb[3].mxu0  ;;  %v831_v32 = vadd.f32 %v830_v37, %v3527_v2  ;;  %v832_v40 = vpop.f32.mrb[3].mxu1 }
 0x16b   : > { %v720_v35 = vadd.f32 %v719_v0, %v3525_v1  ;;  %v833_v41 = vadd.f32 %v832_v40, %v3529_v3  ;;  %v1766_v40 = vpop.xlane.xlu1 %1765 }
 0x16c   : > { %v3560_v39 = vpack.c.bf16 %v718_v27, %v714_v24  ;;  %v3571_v54 = vpack.c.bf16 %v831_v32, %v827_v29 }
 0x16d   : > { %v3565_v43 = vpack.c.bf16 %v720_v35, %v716_v33  ;;  %v3578_v57 = vpack.c.bf16 %v833_v41, %v829_v26 }
 0x16e   : > { %v969_v52 = vmul.bf16 1027030327, %v3560_v39  ;;  %v971_v62 = vmul.bf16 1027030327, %v3571_v54 }
 0x16f   : > { %v970_v56 = vmul.bf16 1027030327, %v3565_v43  ;;  %v723_v58 = vpop.f32.mrb[4].mxu0  ;;  %v972_v10 = vmul.bf16 1027030327, %v3578_v57  ;;  %v836_v18 = vpop.f32.mrb[4].mxu1 }
 0x170   : > { %v1001_v61 = vmul.bf16 %v969_v52, %v3560_v39  ;;  %v725_v28 = vpop.f32.mrb[5].mxu0  ;;  %v724_v13 = vadd.f32 %v723_v58, %v3519_v50  ;;  %v1003_v24 = vmul.bf16 %v971_v62, %v3571_v54  ;;  %v837_v29 = vadd.f32 %v836_v18, %v3527_v2  ;;  %v838_v30 = vpop.f32.mrb[5].mxu1 }
 0x171   : > { %v726_v16 = vadd.f32 %v725_v28, %v3525_v1  ;;  %v727_v17 = vpop.f32.mrb[6].mxu0  ;;  %v1002_v19 = vmul.bf16 %v970_v56, %v3565_v43  ;;  %v839_v35 = vadd.f32 %v838_v30, %v3529_v3  ;;  %v840_v26 = vpop.f32.mrb[6].mxu1  ;;  %v1004_v32 = vmul.bf16 %v972_v10, %v3578_v57 }
 0x172   : > { %v1033_v20 = vmul.bf16 %v1001_v61, %v3560_v39  ;;  %v728_v27 = vadd.f32 %v727_v17, %v3519_v50  ;;  %v729_v0 = vpop.f32.mrb[7].mxu0  ;;  %v1035_v47 = vmul.bf16 %v1003_v24, %v3571_v54  ;;  %v841_v52 = vadd.f32 %v840_v26, %v3527_v2  ;;  %v842_v56 = vpop.f32.mrb[7].mxu1 }
 0x173   : > { %v730_v33 = vadd.f32 %v729_v0, %v3525_v1  ;;  %v1034_v37 = vmul.bf16 %v1002_v19, %v3565_v43  ;;  %v843_v61 = vadd.f32 %v842_v56, %v3529_v3  ;;  %v1036_v28 = vmul.bf16 %v1004_v32, %v3578_v57  ;;  %v3618_v17 = vpop.eup %2894 }
 0x174   : > { %v1065_v41 = vadd.bf16 %v1033_v20, %v3560_v39  ;;  %v3610_v49 = vpack.c.bf16 %v728_v27, %v724_v13  ;;  %v1067_v18 = vadd.bf16 %v1035_v47, %v3571_v54  ;;  %v3621_v19 = vpack.c.bf16 %v841_v52, %v837_v29  ;;  %v3625_v20 = vpop.eup %2896 }
 0x175   : > { %v3613_v58 = vpack.c.bf16 %v730_v33, %v726_v16  ;;  %v1066_v62 = vadd.bf16 %v1034_v37, %v3565_v43  ;;  %v3623_v13 = vmul.f32 0.0078125, %v1766_v40  ;;  %v3628_v24 = vpack.c.bf16 %v843_v61, %v839_v35  ;;  %v3631_v33 = vpop.eup %2898 }
 0x176   : > { %v1097_v10 = vmul.bf16 1061961548, %v1065_v41  ;;  %v1068_v30 = vadd.bf16 %v1036_v28, %v3578_v57  ;;  %4275 = vst [vmem:[#allocation24_spill] sm:$0xff] %v3631_v33  ;;  %v1099_v26 = vmul.bf16 1061961548, %v1067_v18  ;;  %v1819_v32 = vsub.f32 %v3592_v5, %v3575_v55 }
 0x177   : > { %v974_v16 = vmul.bf16 1027030327, %v3613_v58  ;;  %v733_v27 = vpop.f32.mrb[8].mxu0  ;;  %v1098_v0 = vmul.bf16 1061961548, %v1066_v62  ;;  %v846_v47 = vpop.f32.mrb[8].mxu1 }
 0x178   : > { %2900 = vtanh.bf16 %v1097_v10  ;;  %v973_v37 = vmul.bf16 1027030327, %v3610_v49  ;;  %v735_v29 = vpop.f32.mrb[9].mxu0  ;;  %v976_v40 = vmul.bf16 1027030327, %v3628_v24  ;;  %v734_v41 = vadd.f32 %v733_v27, %v3519_v50  ;;  %v848_v10 = vpop.f32.mrb[9].mxu1 }
 0x179   : > { %v737_v35 = vpop.f32.mrb[10].mxu0  ;;  %2902 = vtanh.bf16 %v1098_v0  ;;  %v1100_v52 = vmul.bf16 1061961548, %v1068_v30  ;;  %v736_v56 = vadd.f32 %v735_v29, %v3525_v1  ;;  %v847_v62 = vadd.f32 %v846_v47, %v3527_v2  ;;  %v850_v5 = vpop.f32.mrb[10].mxu1 }
 0x17a   : > { %2904 = vtanh.bf16 %v1099_v26  ;;  %v738_v61 = vadd.f32 %v737_v35, %v3519_v50  ;;  %v739_v28 = vpop.f32.mrb[11].mxu0  ;;  %v849_v55 = vadd.f32 %v848_v10, %v3529_v3  ;;  %v1006_v27 = vmul.bf16 %v974_v16, %v3613_v58  ;;  %v852_v30 = vpop.f32.mrb[11].mxu1 }
 0x17b   : > { %v740_v18 = vadd.f32 %v739_v28, %v3525_v1  ;;  %2906 = vtanh.bf16 %v1100_v52  ;;  %v851_v0 = vadd.f32 %v850_v5, %v3527_v2  ;;  %v1005_v26 = vmul.bf16 %v973_v37, %v3610_v49 }
 0x17c   : > { %v3644_v12 = vpack.c.bf16 %v738_v61, %v734_v41  ;;  %v3650_v29 = vmul.f32 %v3584_v60, %v3584_v60  ;;  %v975_v35 = vmul.bf16 1027030327, %v3621_v19  ;;  %v853_v28 = vadd.f32 %v852_v30, %v3529_v3 }
 0x17d   : > { %v3653_v47 = vpack.c.bf16 %v740_v18, %v736_v56  ;;  %v1038_v52 = vmul.bf16 %v1006_v27, %v3613_v58  ;;  %v3657_v16 = vpack.c.bf16 %v851_v0, %v847_v62  ;;  %v1037_v41 = vmul.bf16 %v1005_v26, %v3610_v49 }
 0x17e   : > { %v1008_v61 = vmul.bf16 %v976_v40, %v3628_v24  ;;  %v3663_v10 = vpack.c.bf16 %v853_v28, %v849_v55  ;;  %v938_v8 = vmul.bf16 1056980736, %v3565_v43  ;;  %v3667_v18 = vadd.f32 1e-05, %v1819_v32 }
 0x17f   : > { %v743_v5 = vpop.f32.mrb[12].mxu0  ;;  %v1070_v56 = vadd.bf16 %v1038_v52, %v3613_v58  ;;  %v940_v62 = vmul.bf16 1056980736, %v3578_v57  ;;  %v939_v27 = vmul.bf16 1056980736, %v3571_v54  ;;  %v1069_v0 = vadd.bf16 %v1037_v41, %v3610_v49  ;;  %v856_v6 = vpop.f32.mrb[12].mxu1 }
 0x180   : > { %v745_v30 = vpop.f32.mrb[13].mxu0  ;;  %v1040_v40 = vmul.bf16 %v1008_v61, %v3628_v24  ;;  %v744_v26 = vadd.f32 %v743_v5, %v3519_v50  ;;  %v1007_v52 = vmul.bf16 %v975_v35, %v3621_v19  ;;  %v857_v7 = vadd.f32 %v856_v6, %v3527_v2  ;;  %v858_v4 = vpop.f32.mrb[13].mxu1 }
 0x181   : > { %v746_v55 = vadd.f32 %v745_v30, %v3525_v1  ;;  %v747_v28 = vpop.f32.mrb[14].mxu0  ;;  %v1102_v43 = vmul.bf16 1061961548, %v1070_v56  ;;  %v1101_v54 = vmul.bf16 1061961548, %v1069_v0  ;;  %v859_v5 = vadd.f32 %v858_v4, %v3529_v3  ;;  %v860_v30 = vpop.f32.mrb[14].mxu1 }
 0x182   : > { %v748_v32 = vadd.f32 %v747_v28, %v3519_v50  ;;  %v749_v57 = vpop.f32.mrb[15].mxu0  ;;  %v1072_v41 = vadd.bf16 %v1040_v40, %v3628_v24  ;;  %v1039_v56 = vmul.bf16 %v1007_v52, %v3621_v19  ;;  %v861_v28 = vadd.f32 %v860_v30, %v3527_v2  ;;  %v862_v6 = vpop.f32.mrb[15].mxu1 }
 0x183   : > { %v2901_v37 = vpop.eup %2900  ;;  %v750_v61 = vadd.f32 %v749_v57, %v3525_v1  ;;  %2908 = vtanh.bf16 %v1102_v43  ;;  %v1768_v0 = vpop.xlane.xlu0 %1767  ;;  %v863_v57 = vadd.f32 %v862_v6, %v3529_v3  ;;  %v978_v43 = vmul.bf16 1027030327, %v3653_v47 }
 0x184   : > { %v2903_v42 = vpop.eup %2902  ;;  %v3682_v35 = vpack.c.bf16 %v748_v32, %v744_v26  ;;  %v1161_v60 = vadd.bf16 1065369472, %v2901_v37  ;;  %2910 = vtanh.bf16 %v1101_v54  ;;  %v1104_v4 = vmul.bf16 1061961548, %v1072_v41 }
 0x185   : > { %v2905_v36 = vpop.eup %2904  ;;  %v3685_v40 = vpack.c.bf16 %v750_v61, %v746_v55  ;;  %v1162_v53 = vadd.bf16 1065369472, %v2903_v42  ;;  %v3689_v52 = vpack.c.bf16 %v861_v28, %v857_v7  ;;  %v937_v26 = vmul.bf16 1056980736, %v3560_v39  ;;  %v2878_v7 = vld [vmem:[%s4232_s7 + $0x8] sm:$0xff]  }
 0x186   : > { %v2907_v33 = vpop.eup %2906  ;;  %v1163_v32 = vadd.bf16 1065369472, %v2905_v36  ;;  %v3692_v30 = vpack.c.bf16 %v863_v57, %v859_v5  ;;  %v3694_v51 = vmul.f32 0.0078125, %v1768_v0  ;;  %v942_v42 = vmul.bf16 1056980736, %v3613_v58 }
 0x187   : > { %v753_v37 = vpop.f32.mrb[16].mxu0  ;;  %v1194_v54 = vmul.bf16 %v1162_v53, %v938_v8  ;;  %v1164_v25 = vadd.bf16 1065369472, %v2907_v33  ;;  %v1193_v61 = vmul.bf16 %v1161_v60, %v937_v26  ;;  %2912 = vtanh.bf16 %v1104_v4  ;;  %v866_v5 = vpop.f32.mrb[16].mxu1 }
 0x188   : > { %v755_v55 = vpop.f32.mrb[17].mxu0  ;;  %v1195_v6 = vmul.bf16 %v1163_v32, %v939_v27  ;;  %v977_v39 = vmul.bf16 1027030327, %v3644_v12  ;;  %v980_v36 = vmul.bf16 1027030327, %v3663_v10  ;;  %v1071_v8 = vadd.bf16 %v1039_v56, %v3621_v19  ;;  %v868_v28 = vpop.f32.mrb[17].mxu1 }
 0x189   : > { %v757_v41 = vpop.f32.mrb[18].mxu0  ;;  %1520 = vmatprep.mubr.bf16.mxu0 %v1194_v54  ;;  %v1196_v53 = vmul.bf16 %v1164_v25, %v940_v62  ;;  %v754_v60 = vadd.f32 %v753_v37, %v3519_v50  ;;  %v867_v58 = vadd.f32 %v866_v5, %v3527_v2  ;;  %v1010_v0 = vmul.bf16 %v978_v43, %v3653_v47  ;;  %v870_v25 = vpop.f32.mrb[18].mxu1 }
 0x18a   : > { %v758_v33 = vadd.f32 %v757_v41, %v3519_v50  ;;  %v759_v27 = vpop.f32.mrb[19].mxu0  ;;  %1521 = vmatmul.mubr.bf16.vlgmr.msra.gmra.mrb[32].mxu0 %v1193_v61  ;;  %v756_v57 = vadd.f32 %v755_v55, %v3525_v1  ;;  %v869_v26 = vadd.f32 %v868_v28, %v3529_v3  ;;  %v1103_v62 = vmul.bf16 1061961548, %v1071_v8  ;;  %v872_v37 = vpop.f32.mrb[19].mxu1  ;;  %v2879_v55 = vld [vmem:[%s4232_s7 + $0x10] sm:$0xff]  }
 0x18b   : > { %v760_v4 = vadd.f32 %v759_v27, %v3525_v1  ;;  %2672 = vmatpush3.bf16.msra.mxu0 %v3486_v45  ;;  %1617 = vmatprep.mubr.bf16.mxu1 %v1196_v53  ;;  %v871_v32 = vadd.f32 %v870_v25, %v3527_v2  ;;  %v941_v43 = vmul.bf16 1056980736, %v3610_v49  ;;  %v1042_v54 = vmul.bf16 %v1010_v0, %v3653_v47 }
 0x18c   : > { %v3711_v56 = vpack.c.bf16 %v758_v33, %v754_v60  ;;  %1618 = vmatmul.mubr.bf16.vlgmr.msra.gmra.mrb[32].mxu1 %v1195_v6  ;;  %2673 = vmatprep.subr.bf16.mxu0 %v2878_v7  ;;  %v873_v45 = vadd.f32 %v872_v37, %v3529_v3  ;;  %2914 = vtanh.bf16 %v1103_v62  ;;  %v1009_v41 = vmul.bf16 %v977_v39, %v3644_v12 }
 0x18d   : > { %v3719_v61 = vpack.c.bf16 %v760_v4, %v756_v57  ;;  %v3723_v53 = vpack.c.bf16 %v871_v32, %v867_v58  ;;  %v944_v6 = vmul.bf16 1056980736, %v3628_v24  ;;  %v1074_v49 = vadd.bf16 %v1042_v54, %v3653_v47 }
 0x18e   : > { %v2909_v5 = vpop.eup %2908  ;;  %v1012_v8 = vmul.bf16 %v980_v36, %v3663_v10  ;;  %v3728_v33 = vpack.c.bf16 %v873_v45, %v869_v26  ;;  %v1041_v57 = vmul.bf16 %v1009_v41, %v3644_v12  ;;  %v979_v39 = vmul.bf16 1027030327, %v3657_v16  ;;  %v2880_v36 = vld [vmem:[%s4232_s7 + $0x18] sm:$0xff]  }
 0x18f   : > { %v2911_v60 = vpop.eup %2910  ;;  %v763_v27 = vpop.f32.mrb[20].mxu0  ;;  %v1166_v28 = vadd.bf16 1065369472, %v2909_v5  ;;  %2674 = vmatpush3.bf16.msra.mxu0 %v2878_v7  ;;  %v982_v26 = vmul.bf16 1027030327, %v3685_v40 }
 0x190   : > { %v764_v58 = vadd.f32 %v763_v27, %v3519_v50  ;;  %v765_v4 = vpop.f32.mrb[21].mxu0  ;;  %v1165_v24 = vadd.bf16 1065369472, %v2911_v60  ;;  %2675 = vmatprep.subr.bf16.mxu0 %v2879_v55  ;;  %v1044_v25 = vmul.bf16 %v1012_v8, %v3663_v10  ;;  %v876_v32 = vpop.f32.mrb[20].mxu1  ;;  %v1106_v54 = vmul.bf16 1061961548, %v1074_v49 }
 0x191   : > { %v766_v7 = vadd.f32 %v765_v4, %v3525_v1  ;;  %v767_v62 = vpop.f32.mrb[22].mxu0  ;;  %v1198_v37 = vmul.bf16 %v1166_v28, %v942_v42  ;;  %v877_v41 = vadd.f32 %v876_v32, %v3527_v2  ;;  %v878_v60 = vpop.f32.mrb[21].mxu1  ;;  %v1073_v8 = vadd.bf16 %v1041_v57, %v3644_v12  ;;  %v2881_v57 = vld [vmem:[%s4232_s7 + $0x20] sm:$0xff]  }
 0x192   : > { %v768_v45 = vadd.f32 %v767_v62, %v3519_v50  ;;  %v769_v5 = vpop.f32.mrb[23].mxu0  ;;  %v1197_v27 = vmul.bf16 %v1165_v24, %v941_v43  ;;  %v2913_v0 = vpop.eup %2912  ;;  %v879_v31 = vadd.f32 %v878_v60, %v3529_v3  ;;  %2916 = vtanh.bf16 %v1106_v54 }
 0x193   : > { %1528 = vmatprep.mubr.bf16.mxu0 %v1198_v37  ;;  %v770_v21 = vadd.f32 %v769_v5, %v3525_v1  ;;  %v880_v4 = vpop.f32.mrb[22].mxu1  ;;  %2676 = vmatpush3.bf16.msra.mxu0 %v2879_v55  ;;  %v1076_v42 = vadd.bf16 %v1044_v25, %v3663_v10  ;;  %v1168_v62 = vadd.bf16 1065369472, %v2913_v0  ;;  %v1105_v24 = vmul.bf16 1061961548, %v1073_v8 }
 0x194   : > { %v3746_v49 = vpack.c.bf16 %v768_v45, %v764_v58  ;;  %1529 = vmatmul.mubr.bf16.gmra.mrb[36].mxu0 %v1197_v27  ;;  %v881_v28 = vadd.f32 %v880_v4, %v3527_v2  ;;  %v882_v43 = vpop.f32.mrb[23].mxu1  ;;  %2677 = vmatprep.subr.bf16.mxu0 %v2880_v36  ;;  %v981_v32 = vmul.bf16 1027030327, %v3682_v35  ;;  %v1011_v27 = vmul.bf16 %v979_v39, %v3657_v16 }
 0x195   : > { %v3753_v37 = vpack.c.bf16 %v770_v21, %v766_v7  ;;  %v883_v55 = vadd.f32 %v882_v43, %v3529_v3  ;;  %v1108_v25 = vmul.bf16 1061961548, %v1076_v42  ;;  %v1200_v45 = vmul.bf16 %v1168_v62, %v944_v6 }
 0x196   : > { %v3757_v54 = vpack.c.bf16 %v881_v28, %v877_v41  ;;  %2918 = vtanh.bf16 %v1105_v24  ;;  %v946_v4 = vmul.bf16 1056980736, %v3653_v47  ;;  %v1014_v6 = vmul.bf16 %v982_v26, %v3685_v40 }
 0x197   : > { %v3760_v5 = vpack.c.bf16 %v883_v55, %v879_v31  ;;  %v773_v60 = vpop.f32.mrb[24].mxu0  ;;  %2920 = vtanh.bf16 %v1108_v25  ;;  %2678 = vmatpush3.bf16.msra.mxu0 %v2880_v36  ;;  %v2915_v21 = vpop.eup %2914  ;;  %1625 = vmatprep.mubr.bf16.mxu1 %v1200_v45  ;;  %v2882_v31 = vld [vmem:[%s4232_s7 + $0x28] sm:$0xff]   ;;  %v1043_v43 = vmul.bf16 %v1011_v27, %v3657_v16 }
 0x198   : > { %v774_v7 = vadd.f32 %v773_v60, %v3519_v50  ;;  %v775_v8 = vpop.f32.mrb[25].mxu0  ;;  %2679 = vmatprep.subr.bf16.mxu0 %v2881_v57  ;;  %v1167_v42 = vadd.bf16 1065369472, %v2915_v21  ;;  %v886_v28 = vpop.f32.mrb[24].mxu1  ;;  %v1046_v45 = vmul.bf16 %v1014_v6, %v3685_v40  ;;  %v4276_v60 = vmul.bf16 1056980736, %v3621_v19 }
 0x199   : > { %v776_v39 = vadd.f32 %v775_v8, %v3525_v1  ;;  %v777_v36 = vpop.f32.mrb[26].mxu0  ;;  %v887_v26 = vadd.f32 %v886_v28, %v3527_v2  ;;  %v888_v25 = vpop.f32.mrb[25].mxu1  ;;  %v1075_v27 = vadd.bf16 %v1043_v43, %v3657_v16  ;;  %v1013_v6 = vmul.bf16 %v981_v32, %v3682_v35  ;;  %v2883_v19 = vld [vmem:[%s4232_s7 + $0x30] sm:$0xff]  }
 0x19a   : > { %v778_v24 = vadd.f32 %v777_v36, %v3519_v50  ;;  %v779_v55 = vpop.f32.mrb[27].mxu0  ;;  %v1199_v21 = vmul.bf16 %v1167_v42, %v4276_v60  ;;  %v889_v58 = vadd.f32 %v888_v25, %v3529_v3  ;;  %v890_v62 = vpop.f32.mrb[26].mxu1  ;;  %v1078_v41 = vadd.bf16 %v1046_v45, %v3685_v40 }
 0x19b   : > { %v780_v8 = vadd.f32 %v779_v55, %v3525_v1  ;;  %2680 = vmatpush3.bf16.msra.mxu0 %v2881_v57  ;;  %v891_v36 = vadd.f32 %v890_v62, %v3527_v2  ;;  %v892_v28 = vpop.f32.mrb[27].mxu1  ;;  %v1045_v32 = vmul.bf16 %v1013_v6, %v3682_v35 }
 0x19c   : > { %v3782_v47 = vpack.c.bf16 %v778_v24, %v774_v7  ;;  %2681 = vmatprep.subr.bf16.mxu0 %v2882_v31  ;;  %1626 = vmatmul.mubr.bf16.gmra.mrb[36].mxu1 %v1199_v21  ;;  %v893_v57 = vadd.f32 %v892_v28, %v3529_v3  ;;  %v1107_v7 = vmul.bf16 1061961548, %v1075_v27  ;;  %v1110_v25 = vmul.bf16 1061961548, %v1078_v41  ;;  %v2884_v41 = vld [vmem:[%s4232_s7 + $0x38] sm:$0xff]  }
 0x19d   : > { %v3791_v55 = vpack.c.bf16 %v780_v8, %v776_v39  ;;  %v2917_v43 = vpop.eup %2916  ;;  %v3795_v24 = vpack.c.bf16 %v891_v36, %v887_v26  ;;  %v1077_v26 = vadd.bf16 %v1045_v32, %v3682_v35 }
 0x19e   : > { %v1170_v60 = vadd.bf16 1065369472, %v2917_v43  ;;  %v3799_v0 = vpack.c.bf16 %v893_v57, %v889_v58  ;;  %2922 = vtanh.bf16 %v1107_v7  ;;  %v4277_v7 = vmul.bf16 1027030327, %v3692_v30 }
 0x19f   : > { %v783_v21 = vpop.f32.mrb[28].mxu0  ;;  %2682 = vmatpush3.bf16.msra.mxu0 %v2882_v31  ;;  %2924 = vtanh.bf16 %v1110_v25  ;;  %v896_v57 = vpop.f32.mrb[28].mxu1  ;;  %v1109_v42 = vmul.bf16 1061961548, %v1077_v26  ;;  %v4279_v26 = vmul.bf16 1056980736, %v3663_v10 }
 0x1a0   : > { %v784_v8 = vadd.f32 %v783_v21, %v3519_v50  ;;  %v785_v27 = vpop.f32.mrb[29].mxu0  ;;  %2683 = vmatprep.subr.bf16.mxu0 %v2883_v19  ;;  %v1202_v28 = vmul.bf16 %v1170_v60, %v946_v4  ;;  %v1016_v43 = vmul.bf16 %v4277_v7, %v3692_v30  ;;  %v897_v39 = vadd.f32 %v896_v57, %v3527_v2  ;;  %v898_v45 = vpop.f32.mrb[29].mxu1 }
 0x1a1   : > { %v2919_v36 = vpop.eup %2918  ;;  %v786_v6 = vadd.f32 %v785_v27, %v3525_v1  ;;  %v787_v31 = vpop.f32.mrb[30].mxu0  ;;  %v899_v60 = vadd.f32 %v898_v45, %v3529_v3  ;;  %v4278_v7 = vmul.bf16 1056980736, %v3644_v12  ;;  %2926 = vtanh.bf16 %v1109_v42 }
 0x1a2   : > { %v2921_v25 = vpop.eup %2920  ;;  %v1169_v21 = vadd.bf16 1065369472, %v2919_v36  ;;  %v788_v32 = vadd.f32 %v787_v31, %v3519_v50  ;;  %v789_v62 = vpop.f32.mrb[31].mxu0  ;;  %1536 = vmatprep.mubr.bf16.mxu0 %v1202_v28  ;;  %v1048_v38 = vmul.bf16 %v1016_v43, %v3692_v30  ;;  %v991_v12 = vmul.bf16 1027030327, %v3757_v54 }
 0x1a3   : > { %v1172_v58 = vadd.bf16 1065369472, %v2921_v25  ;;  %v790_v4 = vadd.f32 %v789_v62, %v3525_v1  ;;  %v900_v27 = vpop.f32.mrb[30].mxu1  ;;  %2684 = vmatpush3.bf16.msra.mxu0 %v2883_v19  ;;  %v990_v19 = vmul.bf16 1027030327, %v3753_v37 }
 0x1a4   : > { %v1201_v36 = vmul.bf16 %v1169_v21, %v4278_v7  ;;  %v3819_v11 = vpack.c.bf16 %v788_v32, %v784_v8  ;;  %v901_v50 = vadd.f32 %v900_v27, %v3527_v2  ;;  %v902_v31 = vpop.f32.mrb[31].mxu1  ;;  %2685 = vmatprep.subr.bf16.mxu0 %v2884_v41  ;;  %v1080_v62 = vadd.bf16 %v1048_v38, %v3692_v30 }
 0x1a5   : > { %v1204_v28 = vmul.bf16 %v1172_v58, %v4279_v26  ;;  %v3824_v1 = vpack.c.bf16 %v790_v4, %v786_v6  ;;  %v903_v45 = vadd.f32 %v902_v31, %v3529_v3  ;;  %v4280_v2 = vmul.bf16 1027030327, %v3689_v52 }
 0x1a6   : > { %1537 = vmatmul.mubr.bf16.gmra.mrb[40].mxu0 %v1201_v36  ;;  %v3830_v8 = vpack.c.bf16 %v901_v50, %v897_v39  ;;  %v992_v10 = vmul.bf16 1027030327, %v3760_v5  ;;  %v950_v58 = vmul.bf16 1056980736, %v3685_v40  ;;  %v1112_v6 = vmul.bf16 1061961548, %v1080_v62 }
 0x1a7   : > { %v1015_v42 = vmul.bf16 %v4280_v2, %v3689_v52  ;;  %1633 = vmatprep.mubr.bf16.mxu1 %v1204_v28  ;;  %v3837_v38 = vpack.c.bf16 %v903_v45, %v899_v60  ;;  %2686 = vmatpush3.bf16.msra.mxu0 %v2884_v41  ;;  %v949_v3 = vmul.bf16 1056980736, %v3682_v35  ;;  %v952_v57 = vmul.bf16 1056980736, %v3692_v30 }
 0x1a8   : > { %v4281_v43 = vmul.bf16 1027030327, %v3719_v61  ;;  %v993_v21 = vmul.bf16 1027030327, %v3782_v47  ;;  %v994_v32 = vmul.bf16 1027030327, %v3791_v55  ;;  %2928 = vtanh.bf16 %v1112_v6 }
 0x1a9   : > { %v1047_v39 = vmul.bf16 %v1015_v42, %v3689_v52  ;;  %v4282_v40 = vmul.bf16 1027030327, %v3711_v56  ;;  %v2923_v41 = vpop.eup %2922  ;;  %v4283_v7 = vmul.bf16 1027030327, %v3728_v33  ;;  %v996_v31 = vmul.bf16 1027030327, %v3799_v0 }
 0x1aa   : > { %v1018_v25 = vmul.bf16 %v4281_v43, %v3719_v61  ;;  %v2925_v50 = vpop.eup %2924  ;;  %v1171_v26 = vadd.bf16 1065369472, %v2923_v41  ;;  %v4284_v62 = vmul.bf16 1027030327, %v3723_v53  ;;  %v4285_v43 = vmul.bf16 1056980736, %v3657_v16 }
 0x1ab   : > { %v1017_v4 = vmul.bf16 %v4282_v40, %v3711_v56  ;;  %v1079_v60 = vadd.bf16 %v1047_v39, %v3689_v52  ;;  %v1020_v36 = vmul.bf16 %v4283_v7, %v3728_v33  ;;  %v1174_v2 = vadd.bf16 1065369472, %v2925_v50 }
 0x1ac   : > { %v1050_v27 = vmul.bf16 %v1018_v25, %v3719_v61  ;;  %v1019_v45 = vmul.bf16 %v4284_v62, %v3723_v53  ;;  %v1203_v25 = vmul.bf16 %v1171_v26, %v4285_v43  ;;  %v1022_v41 = vmul.bf16 %v990_v19, %v3753_v37  ;;  %v2927_v50 = vpop.eup %2926 }
 0x1ad   : > { %v1049_v28 = vmul.bf16 %v1017_v4, %v3711_v56  ;;  %v1111_v42 = vmul.bf16 1061961548, %v1079_v60  ;;  %v1052_v39 = vmul.bf16 %v1020_v36, %v3728_v33  ;;  %v1206_v4 = vmul.bf16 %v1174_v2, %v950_v58 }
 0x1ae   : > { %v1082_v6 = vadd.bf16 %v1050_v27, %v3719_v61  ;;  %v1051_v7 = vmul.bf16 %v1019_v45, %v3723_v53  ;;  %1634 = vmatmul.mubr.bf16.gmra.mrb[40].mxu1 %v1203_v25  ;;  %v997_v60 = vmul.bf16 1027030327, %v3819_v11  ;;  %v1054_v16 = vmul.bf16 %v1022_v41, %v3753_v37 }
 0x1af   : > { %v1081_v40 = vadd.bf16 %v1049_v28, %v3711_v56  ;;  %2930 = vtanh.bf16 %v1111_v42  ;;  %v1084_v62 = vadd.bf16 %v1052_v39, %v3728_v33  ;;  %1544 = vmatprep.mubr.bf16.mxu0 %v1206_v4  ;;  %v1173_v26 = vadd.bf16 1065369472, %v2927_v50 }
 0x1b0   : > { %v1114_v35 = vmul.bf16 1061961548, %v1082_v6  ;;  %v1083_v36 = vadd.bf16 %v1051_v7, %v3723_v53  ;;  %v4286_v19 = vmul.bf16 1027030327, %v3746_v49  ;;  %v951_v45 = vmul.bf16 1056980736, %v3689_v52 }
 0x1b1   : > { %v1113_v27 = vmul.bf16 1061961548, %v1081_v40  ;;  %v1116_v28 = vmul.bf16 1061961548, %v1084_v62  ;;  %v1086_v42 = vadd.bf16 %v1054_v16, %v3753_v37  ;;  %v1205_v6 = vmul.bf16 %v1173_v26, %v949_v3 }
 0x1b2   : > { %2932 = vtanh.bf16 %v1114_v35  ;;  %v1021_v58 = vmul.bf16 %v4286_v19, %v3746_v49  ;;  %v1115_v2 = vmul.bf16 1061961548, %v1083_v36  ;;  %v1024_v43 = vmul.bf16 %v992_v10, %v3760_v5 }
 0x1b3   : > { %2934 = vtanh.bf16 %v1113_v27  ;;  %v998_v25 = vmul.bf16 1027030327, %v3824_v1  ;;  %v1118_v35 = vmul.bf16 1061961548, %v1086_v42  ;;  %v1023_v40 = vmul.bf16 %v991_v12, %v3757_v54  ;;  %v2929_v7 = vpop.eup %2928  ;;  %1545 = vmatmul.mubr.bf16.gmra.mrb[44].mxu0 %v1205_v6  ;;  %v3887_v27 = vpop.xlane.xlu1 %1769 }
 0x1b4   : > { %2936 = vtanh.bf16 %v1116_v28  ;;  %v1053_v39 = vmul.bf16 %v1021_v58, %v3746_v49  ;;  %v954_v52 = vmul.bf16 1056980736, %v3719_v61  ;;  %v1056_v4 = vmul.bf16 %v1024_v43, %v3760_v5 }
 0x1b5   : > { %2938 = vtanh.bf16 %v1115_v2  ;;  %v1026_v3 = vmul.bf16 %v994_v32, %v3791_v55  ;;  %v999_v62 = vmul.bf16 1027030327, %v3830_v8  ;;  %v1176_v50 = vadd.bf16 1065369472, %v2929_v7 }
 0x1b6   : > { %v1085_v41 = vadd.bf16 %v1053_v39, %v3746_v49  ;;  %2940 = vtanh.bf16 %v1118_v35  ;;  %v1055_v10 = vmul.bf16 %v1023_v40, %v3757_v54  ;;  %v1088_v12 = vadd.bf16 %v1056_v4, %v3760_v5  ;;  %v1707_v35 = vpop.xlane.xlu0 %1706 }
 0x1b7   : > { %v1058_v16 = vmul.bf16 %v1026_v3, %v3791_v55  ;;  %v1025_v61 = vmul.bf16 %v993_v21, %v3782_v47  ;;  %v1208_v32 = vmul.bf16 %v1176_v50, %v952_v57  ;;  %v953_v26 = vmul.bf16 1056980736, %v3711_v56 }
 0x1b8   : > { %v1117_v36 = vmul.bf16 1061961548, %v1085_v41  ;;  %v1087_v28 = vadd.bf16 %v1055_v10, %v3757_v54  ;;  %v1028_v19 = vmul.bf16 %v996_v31, %v3799_v0  ;;  %v1120_v58 = vmul.bf16 1061961548, %v1088_v12 }
 0x1b9   : > { %v1090_v2 = vadd.bf16 %v1058_v16, %v3791_v55  ;;  %v1057_v42 = vmul.bf16 %v1025_v61, %v3782_v47  ;;  %1641 = vmatprep.mubr.bf16.mxu1 %v1208_v32  ;;  %v1000_v39 = vmul.bf16 1027030327, %v3837_v38  ;;  %v4287_v56 = vmul.bf16 1027030327, %v3795_v24 }
 0x1ba   : > { %2942 = vtanh.bf16 %v1117_v36  ;;  %v2931_v6 = vpop.eup %2930  ;;  %v1119_v21 = vmul.bf16 1061961548, %v1087_v28  ;;  %v1060_v30 = vmul.bf16 %v1028_v19, %v3799_v0  ;;  %v956_v41 = vmul.bf16 1056980736, %v3728_v33  ;;  %v1709_v36 = vpop.xlane.xlu1 %1708 }
 0x1bb   : > { %v1027_v57 = vmul.bf16 %v4287_v56, %v3795_v24  ;;  %v1175_v43 = vadd.bf16 1065369472, %v2931_v6  ;;  %2944 = vtanh.bf16 %v1120_v58  ;;  %v1122_v31 = vmul.bf16 1061961548, %v1090_v2 }
 0x1bc   : > { %v1089_v40 = vadd.bf16 %v1057_v42, %v3782_v47  ;;  %2946 = vtanh.bf16 %v1119_v21  ;;  %v1092_v4 = vadd.bf16 %v1060_v30, %v3799_v0  ;;  %v1030_v58 = vmul.bf16 %v998_v25, %v3824_v1 }
 0x1bd   : > { %v2933_v7 = vpop.eup %2932  ;;  %v1059_v3 = vmul.bf16 %v1027_v57, %v3795_v24  ;;  %v1207_v10 = vmul.bf16 %v1175_v43, %v951_v45  ;;  %2948 = vtanh.bf16 %v1122_v31  ;;  %v955_v6 = vmul.bf16 1056980736, %v3723_v53  ;;  %v3915_v43 = vpop.xlane.xlu0 %1710 }
 0x1be   : > { %v2935_v50 = vpop.eup %2934  ;;  %v1178_v12 = vadd.bf16 1065369472, %v2933_v7  ;;  %v1121_v16 = vmul.bf16 1061961548, %v1089_v40  ;;  %v1124_v28 = vmul.bf16 1061961548, %v1092_v4  ;;  %v1062_v25 = vmul.bf16 %v1030_v58, %v3824_v1  ;;  %v1713_v7 = vpop.xlane.xlu1 %1712 }
 0x1bf   : > { %v2937_v61 = vpop.eup %2936  ;;  %v1177_v32 = vadd.bf16 1065369472, %v2935_v50  ;;  %v1091_v19 = vadd.bf16 %v1059_v3, %v3795_v24  ;;  %1642 = vmatmul.mubr.bf16.gmra.mrb[44].mxu1 %v1207_v10  ;;  %v3913_v57 = vmul.f32 0.0078125, %v1707_v35  ;;  %v958_v53 = vmul.bf16 1056980736, %v3753_v37 }
 0x1c0   : > { %v2939_v2 = vpop.eup %2938  ;;  %v1210_v33 = vmul.bf16 %v1178_v12, %v954_v52  ;;  %v1180_v42 = vadd.bf16 1065369472, %v2937_v61  ;;  %2950 = vtanh.bf16 %v1121_v16  ;;  %v1029_v52 = vmul.bf16 %v997_v60, %v3819_v11 }
 0x1c1   : > { %v1209_v21 = vmul.bf16 %v1177_v32, %v953_v26  ;;  %v1179_v45 = vadd.bf16 1065369472, %v2939_v2  ;;  %2952 = vtanh.bf16 %v1124_v28  ;;  %v1123_v30 = vmul.bf16 1061961548, %v1091_v19  ;;  %v2941_v56 = vpop.eup %2940  ;;  %v1772_v2 = vpop.xlane.xlu0 %1771 }
 0x1c2   : > { %1552 = vmatprep.mubr.bf16.mxu0 %v1210_v33  ;;  %v1212_v31 = vmul.bf16 %v1180_v42, %v956_v41  ;;  %v1182_v26 = vadd.bf16 1065369472, %v2941_v56  ;;  %v1032_v40 = vmul.bf16 %v1000_v39, %v3837_v38  ;;  %v1094_v4 = vadd.bf16 %v1062_v25, %v3824_v1 }
 0x1c3   : > { %1553 = vmatmul.mubr.bf16.gmra.mrb[48].mxu0 %v1209_v21  ;;  %2954 = vtanh.bf16 %v1123_v30  ;;  %v1211_v35 = vmul.bf16 %v1179_v45, %v955_v6  ;;  %v1061_v41 = vmul.bf16 %v1029_v52, %v3819_v11  ;;  %v1031_v3 = vmul.bf16 %v999_v62, %v3830_v8 }
 0x1c4   : > { %1649 = vmatprep.mubr.bf16.mxu1 %v1212_v31  ;;  %v3929_v60 = vmul.f32 0.0078125, %v3887_v27  ;;  %v1214_v37 = vmul.bf16 %v1182_v26, %v958_v53  ;;  %v960_v10 = vmul.bf16 1056980736, %v3760_v5  ;;  %v1064_v39 = vmul.bf16 %v1032_v40, %v3837_v38  ;;  %v1774_v31 = vpop.xlane.xlu1 %1773 }
 0x1c5   : > { %v2943_v50 = vpop.eup %2942  ;;  %v1126_v16 = vmul.bf16 1061961548, %v1094_v4  ;;  %v1093_v61 = vadd.bf16 %v1061_v41, %v3819_v11  ;;  %v1063_v32 = vmul.bf16 %v1031_v3, %v3830_v8  ;;  %v3935_v19 = vmul.f32 0.0078125, %v1709_v36 }
 0x1c6   : > { %v1181_v12 = vadd.bf16 1065369472, %v2943_v50  ;;  %v2945_v28 = vpop.eup %2944  ;;  %v3939_v62 = vmul.f32 %v3913_v57, %v3913_v57  ;;  %1560 = vmatprep.mubr.bf16.mxu0 %v1214_v37  ;;  %v957_v27 = vmul.bf16 1056980736, %v3746_v49  ;;  %v1096_v5 = vadd.bf16 %v1064_v39, %v3837_v38 }
 0x1c7   : > { %v2947_v58 = vpop.eup %2946  ;;  %1650 = vmatmul.mubr.bf16.gmra.mrb[48].mxu1 %v1211_v35  ;;  %v1184_v33 = vadd.bf16 1065369472, %v2945_v28  ;;  %v959_v42 = vmul.bf16 1056980736, %v3757_v54  ;;  %2956 = vtanh.bf16 %v1126_v16  ;;  %v1125_v6 = vmul.bf16 1061961548, %v1093_v61 }
 0x1c8   : > { %v2949_v21 = vpop.eup %2948  ;;  %v1213_v36 = vmul.bf16 %v1181_v12, %v957_v27  ;;  %v1183_v45 = vadd.bf16 1065369472, %v2947_v58  ;;  %v1128_v30 = vmul.bf16 1061961548, %v1096_v5  ;;  %v1095_v56 = vadd.bf16 %v1063_v32, %v3830_v8 }
 0x1c9   : > { %v1216_v25 = vmul.bf16 %v1184_v33, %v960_v10  ;;  %v962_v49 = vmul.bf16 1056980736, %v3791_v55  ;;  %v1186_v52 = vadd.bf16 1065369472, %v2949_v21  ;;  %2958 = vtanh.bf16 %v1125_v6 }
 0x1ca   : > { %v1791_v26 = vmul.f32 0.0078125, %v1772_v2  ;;  %v964_v40 = vmul.bf16 1056980736, %v3799_v0  ;;  %2960 = vtanh.bf16 %v1128_v30  ;;  %v1127_v54 = vmul.bf16 1061961548, %v1095_v56 }
 0x1cb   : > { %v2951_v53 = vpop.eup %2950  ;;  %1561 = vmatmul.mubr.bf16.gmra.mrb[52].mxu0 %v1213_v36  ;;  %v4288_v4 = vsub.f32 %v3623_v13, %v3582_v59  ;;  %v1808_v3 = vmul.f32 %v3935_v19, %v3935_v19  ;;  %1657 = vmatprep.mubr.bf16.mxu1 %v1216_v25  ;;  %v1215_v50 = vmul.bf16 %v1183_v45, %v959_v42  ;;  %v1792_v37 = vmul.f32 0.0078125, %v1774_v31 }
 0x1cc   : > { %v2953_v35 = vpop.eup %2952  ;;  %v1218_v55 = vmul.bf16 %v1186_v52, %v962_v49  ;;  %v1185_v10 = vadd.bf16 1065369472, %v2951_v53  ;;  %2962 = vtanh.bf16 %v1127_v54  ;;  %v1822_v0 = vsub.f32 %v3929_v60, %v3650_v29  ;;  %v1776_v29 = vpop.xlane.xlu0 %1775 }
 0x1cd   : > { %v1852_v41 = vadd.f32 1e-05, %v4288_v4  ;;  %v1188_v39 = vadd.bf16 1065369472, %v2953_v35  ;;  %2964 = vrsqrt.f32 %v3568_v44  ;;  %v1821_v59 = vsub.f32 %v3694_v51, %v3590_v63 }
 0x1ce   : > { %v2955_v12 = vpop.eup %2954  ;;  %v3958_v13 = vmul.f32 0.0078125, %v3915_v43  ;;  %1568 = vmatprep.mubr.bf16.mxu0 %v1218_v55  ;;  %v3960_v16 = vmul.f32 0.0078125, %v1713_v7  ;;  %v1823_v61 = vsub.f32 %v1791_v26, %v3939_v62  ;;  %v961_v32 = vmul.bf16 1056980736, %v3782_v47  ;;  %v1778_v7 = vpop.xlane.xlu1 %1777  ;;  %v3973_v47 = vld [vmem:[%s4231_s6] ss:$0 sm:$0xff] }
 0x1cf   : > { %v1220_v28 = vmul.bf16 %v1188_v39, %v964_v40  ;;  %v4289_v44 = vsub.f32 %v3417_v34, %v3493_v15  ;;  %2966 = vrsqrt.f32 %v3667_v18  ;;  %1658 = vmatmul.mubr.bf16.gmra.mrb[52].mxu1 %v1215_v50  ;;  %v963_v51 = vmul.bf16 1056980736, %v3795_v24  ;;  %v2984_v55 = vld [vmem:[%s3393_s30 + $0x48] sm:$0xff]  ;;  %v4294_v39 = vld [vmem:[#allocation20_spill] sm:$0xff] }
 0x1d0   : > { %v1187_v63 = vadd.bf16 1065369472, %v2955_v12  ;;  %2968 = vrsqrt.f32 %v1852_v41  ;;  %v1824_v43 = vsub.f32 %v1792_v37, %v1808_v3  ;;  %v1217_v60 = vmul.bf16 %v1185_v10, %v961_v32  ;;  %v4293_v37 = vld [vmem:[#allocation21_spill] sm:$0xff]  ;;  %v2985_v10 = vld [vmem:[%s3393_s30 + $0x40] sm:$0xff] }
 0x1d1   : > { %v1878_v27 = vmul.f32 %v3594_v9, %v4289_v44  ;;  %1665 = vmatprep.mubr.bf16.mxu1 %v1220_v28  ;;  %v1922_v34 = vadd.f32 %v3973_v47, %v3546_v14  ;;  %v1854_v15 = vadd.f32 1e-05, %v1822_v0  ;;  %v1853_v9 = vadd.f32 1e-05, %v1821_v59  ;;  %v4295_v0 = vld [vmem:[#allocation19_spill] sm:$0xff]  ;;  %v4296_v44 = vld [vmem:[#allocation14_spill] sm:$0xff] }
 0x1d2   : > { %v4290_v18 = vsub.f32 %v3433_v46, %v3499_v23  ;;  %v4291_v62 = vsub.f32 %v3436_v48, %v3497_v22  ;;  %v2957_v58 = vpop.eup %2956  ;;  %v1810_v2 = vmul.f32 %v3960_v16, %v3960_v16  ;;  %v1809_v33 = vmul.f32 %v3958_v13, %v3958_v13  ;;  %v3994_v22 = vld [vmem:[%s4230_s5] ss:$0 sm:$0xff] }
 0x1d3   : > { %v1855_v14 = vadd.f32 1e-05, %v1823_v61  ;;  %v1793_v42 = vmul.f32 0.0078125, %v1776_v29  ;;  %1569 = vmatmul.mubr.bf16.gmra.mrb[56].mxu0 %v1217_v60  ;;  %v1794_v6 = vmul.f32 0.0078125, %v1778_v7  ;;  %v1219_v21 = vmul.bf16 %v1187_v63, %v963_v51  ;;  %v4299_v51 = vld [vmem:[#allocation24_spill] sm:$0xff]  ;;  %v4301_v7 = vld [vmem:[#allocation17_spill] sm:$0xff] }
 0x1d4   : > { %v1879_v24 = vmul.f32 %v3618_v17, %v4290_v18  ;;  %v1880_v5 = vmul.f32 %v3625_v20, %v4291_v62  ;;  %v966_v46 = vmul.bf16 1056980736, %v3824_v1  ;;  %v1190_v23 = vadd.bf16 1065369472, %v2957_v58  ;;  %v2959_v17 = vpop.eup %2958  ;;  %v4292_v20 = vld [vmem:[#allocation18_spill] sm:$0xff] }
 0x1d5   : > { %v1856_v36 = vadd.f32 1e-05, %v1824_v43  ;;  %v968_v48 = vmul.bf16 1056980736, %v3837_v38  ;;  %v1900_v45 = vmul.f32 %v3994_v22, %v4292_v20  ;;  %v1901_v30 = vmul.f32 %v3994_v22, %v1878_v27  ;;  %v2961_v56 = vpop.eup %2960  ;;  %v4297_v27 = vld [vmem:[#allocation16_spill] sm:$0xff]  ;;  %v4300_v43 = vld [vmem:[#allocation15_spill] sm:$0xff] }
 0x1d6   : > { %2970 = vrsqrt.f32 %v1853_v9  ;;  %v1222_v31 = vmul.bf16 %v1190_v23, %v966_v46  ;;  %v1189_v25 = vadd.bf16 1065369472, %v2959_v17  ;;  %v1902_v1 = vmul.f32 %v3994_v22, %v1879_v24  ;;  %v2987_v46 = vld [vmem:[%s3393_s30 + $0x50] sm:$0xff]  ;;  %v4304_v23 = vld [vmem:[#allocation22_spill] sm:$0xff] }
 0x1d7   : > { %2972 = vrsqrt.f32 %v1854_v15  ;;  %v1825_v49 = vsub.f32 %v1793_v42, %v1809_v33  ;;  %v965_v38 = vmul.bf16 1056980736, %v3819_v11  ;;  %v1192_v52 = vadd.bf16 1065369472, %v2961_v56  ;;  %v2963_v53 = vpop.eup %2962  ;;  %1666 = vmatmul.mubr.bf16.gmra.mrb[56].mxu1 %v1219_v21  ;;  %v2986_v42 = vld [vmem:[%s3393_s30 + $0x58] sm:$0xff]  ;;  %v2989_v56 = vld [vmem:[%s3393_s30 + $0x60] sm:$0xff] }
 0x1d8   : > { %v2965_v26 = vpop.eup %2964  ;;  %2974 = vrsqrt.f32 %v1855_v14  ;;  %v1826_v40 = vsub.f32 %v1794_v6, %v1810_v2  ;;  %1576 = vmatprep.mubr.bf16.mxu0 %v1222_v31  ;;  %v967_v54 = vmul.bf16 1056980736, %v3830_v8  ;;  %v1903_v35 = vmul.f32 %v3994_v22, %v1880_v5  ;;  %v4303_v6 = vld [vmem:[#allocation23_spill] sm:$0xff] }
 0x1d9   : > { %2976 = vrsqrt.f32 %v1856_v36  ;;  %v1221_v4 = vmul.bf16 %v1189_v25, %v965_v38  ;;  %v1224_v41 = vmul.bf16 %v1192_v52, %v968_v48  ;;  %v1191_v3 = vadd.bf16 1065369472, %v2963_v53  ;;  %v2967_v50 = vpop.eup %2966 }
 0x1da   : > { %v1836_v11 = vsub.f32 %v2984_v55, %v4293_v37  ;;  %v1835_v12 = vsub.f32 %v2985_v10, %v4294_v39  ;;  %v1937_v59 = vpack.c.bf16 %v1922_v34, %v4295_v0  ;;  %v2969_v61 = vpop.eup %2968  ;;  %v1857_v32 = vadd.f32 1e-05, %v1825_v49 }
 0x1db   : > { %1577 = vmatmul.mubr.bf16.gmra.mrb[60].mxu0 %v1221_v4  ;;  %1673 = vmatprep.mubr.bf16.mxu1 %v1224_v41  ;;  %v1858_v8 = vadd.f32 1e-05, %v1826_v40  ;;  %v1223_v28 = vmul.bf16 %v1191_v3, %v967_v54  ;;  %v4298_v29 = vsub.f32 %v4296_v44, %v4297_v27  ;;  %v4302_v60 = vsub.f32 %v4300_v43, %v4301_v7  ;;  %v2990_v41 = vld [vmem:[%s3393_s30 + $0x78] sm:$0xff] }
 0x1dc   : > { %2687 = vmatprep.mubr.bf16.mxu0 %v1937_v59  ;;  %v1923_v34 = vadd.f32 %v3973_v47, %v1900_v45  ;;  %v1924_v9 = vadd.f32 %v3973_v47, %v1901_v30  ;;  %v1925_v18 = vadd.f32 %v3973_v47, %v1902_v1  ;;  %v1926_v24 = vadd.f32 %v3973_v47, %v1903_v35  ;;  %v2988_v45 = vld [vmem:[%s3393_s30 + $0x68] sm:$0xff] }
 0x1dd   : > { %v1881_v63 = vmul.f32 %v4299_v51, %v4298_v29  ;;  %v1882_v15 = vmul.f32 %v2965_v26, %v4302_v60  ;;  %v1883_v62 = vmul.f32 %v2967_v50, %v1835_v12  ;;  %v1884_v5 = vmul.f32 %v2969_v61, %v1836_v11  ;;  %v2991_v50 = vld [vmem:[%s3393_s30 + $0x70] sm:$0xff]  ;;  %v2885_v51 = vld [vmem:[%s4234_s9] sm:$0xff]  }
 0x1de   : > { %2978 = vrsqrt.f32 %v1857_v32  ;;  %v1838_v21 = vsub.f32 %v2986_v42, %v4303_v6  ;;  %v1837_v17 = vsub.f32 %v2987_v46, %v4304_v23  ;;  %v1938_v36 = vpack.c.bf16 %v1924_v9, %v1923_v34  ;;  %2703 = vmatprep.subr.bf16.mxu1 %v2885_v51 }
 0x1df   : > { %2980 = vrsqrt.f32 %v1858_v8  ;;  %1674 = vmatmul.mubr.bf16.gmra.mrb[60].mxu1 %v1223_v28  ;;  %v1904_v2 = vmul.f32 %v3994_v22, %v1881_v63  ;;  %v1905_v33 = vmul.f32 %v3994_v22, %v1882_v15  ;;  %v1939_v48 = vpack.c.bf16 %v1926_v24, %v1925_v18 }
 0x1e0   : > { %v2971_v58 = vpop.eup %2970  ;;  %v1840_v30 = vsub.f32 %v2988_v45, %v3935_v19  ;;  %v1839_v31 = vsub.f32 %v2989_v56, %v3913_v57  ;;  %v1906_v25 = vmul.f32 %v3994_v22, %v1883_v62  ;;  %v1907_v1 = vmul.f32 %v3994_v22, %v1884_v5  ;;  %2704 = vmatpush3.bf16.msra.mxu1 %v2885_v51 }
 0x1e1   : > { %v2973_v14 = vpop.eup %2972  ;;  %v1927_v38 = vadd.f32 %v3973_v47, %v1904_v2  ;;  %v1928_v52 = vadd.f32 %v3973_v47, %v1905_v33  ;;  %v1885_v53 = vmul.f32 %v2971_v58, %v1837_v17  ;;  %v1842_v3 = vsub.f32 %v2990_v41, %v3960_v16 }
 0x1e2   : > { %v2975_v20 = vpop.eup %2974  ;;  %v1886_v26 = vmul.f32 %v2973_v14, %v1838_v21  ;;  %v1929_v19 = vadd.f32 %v3973_v47, %v1906_v25  ;;  %v1930_v40 = vadd.f32 %v3973_v47, %v1907_v1  ;;  %v1841_v55 = vsub.f32 %v2991_v50, %v3958_v13 }
 0x1e3   : > { %v2977_v49 = vpop.eup %2976  ;;  %2688 = vmatmul.mubr.bf16.vlgmr.msra.gmra.mrb[64].mxu0 %v1938_v36  ;;  %v1887_v57 = vmul.f32 %v2975_v20, %v1839_v31  ;;  %v1940_v35 = vpack.c.bf16 %v1928_v52, %v1927_v38  ;;  %v1908_v37 = vmul.f32 %v3994_v22, %v1885_v53 }
 0x1e4   : > { %2691 = vmatprep.mubr.bf16.mxu0 %v1939_v48  ;;  %v1888_v54 = vmul.f32 %v2977_v49, %v1840_v30  ;;  %v1909_v11 = vmul.f32 %v3994_v22, %v1886_v26  ;;  %v1941_v39 = vpack.c.bf16 %v1930_v40, %v1929_v19 }
 0x1e5   : > { %v1910_v12 = vmul.f32 %v3994_v22, %v1887_v57  ;;  %v1931_v59 = vadd.f32 %v3973_v47, %v1908_v37 }
 0x1e6   : > { %v1911_v0 = vmul.f32 %v3994_v22, %v1888_v54  ;;  %v1932_v61 = vadd.f32 %v3973_v47, %v1909_v11 }
 0x1e7   : > { %v1933_v13 = vadd.f32 %v3973_v47, %v1910_v12 }
 0x1e8   : > { %v2979_v4 = vpop.eup %2978  ;;  %v1934_v8 = vadd.f32 %v3973_v47, %v1911_v0  ;;  %v1942_v28 = vpack.c.bf16 %v1932_v61, %v1931_v59 }
 0x1e9   : > { %v2981_v10 = vpop.eup %2980  ;;  %v1889_v16 = vmul.f32 %v2979_v4, %v1841_v55 }
 0x1ea   : > { %v1890_v32 = vmul.f32 %v2981_v10, %v1842_v3  ;;  %v1943_v29 = vpack.c.bf16 %v1934_v8, %v1933_v13 }
 0x1eb   : > { %2692 = vmatmul.mubr.bf16.gmra.mrb[68].mxu0 %v1940_v35  ;;  %v1912_v44 = vmul.f32 %v3994_v22, %v1889_v16 }
 0x1ec   : > { %2695 = vmatprep.mubr.bf16.mxu0 %v1941_v39  ;;  %v1913_v27 = vmul.f32 %v3994_v22, %v1890_v32  ;;  %v4057_v22 = vld [vmem:[%s4229_s4] ss:$0 sm:$0xff] }
 0x1ed   : > { %v1935_v63 = vadd.f32 %v3973_v47, %v1912_v44 }
 0x1ee   : > { %v1936_v43 = vadd.f32 %v3973_v47, %v1913_v27 }
 0x1f0   : > { %v1944_v7 = vpack.c.bf16 %v1936_v43, %v1935_v63 }
 0x1f3   : > { %2696 = vmatmul.mubr.bf16.gmra.mrb[72].mxu0 %v1942_v28 }
 0x1f4   : > { %2699 = vmatprep.mubr.bf16.mxu0 %v1943_v29 }
 0x1fb   : > { %2700 = vmatmul.mubr.bf16.gmra.mrb[76].mxu0 %v1944_v7 }
 0x25d   : > { %v2534_v60 = vpop.f32.mrb[32].mxu0 }
 0x25e   : > { %v2535_v15 = vpop.f32.mrb[33].mxu0 }
 0x25f   : > { %v2536_v34 = vadd.f32 %v2535_v15, %v2534_v60  ;;  %v2537_v9 = vpop.f32.mrb[34].mxu0  ;;  %v2598_v18 = vpop.f32.mrb[32].mxu1 }
 0x260   : > { %v2538_v24 = vpop.f32.mrb[35].mxu0  ;;  %v2599_v62 = vpop.f32.mrb[33].mxu1 }
 0x261   : > { %v1523_v5 = vadd.f32 %v2536_v34, %v4057_v22  ;;  %v2539_v58 = vadd.f32 %v2538_v24, %v2537_v9  ;;  %v2600_v2 = vadd.f32 %v2599_v62, %v2598_v18  ;;  %v2601_v47 = vpop.f32.mrb[34].mxu1 }
 0x262   : > { %v2602_v33 = vpop.f32.mrb[35].mxu1 }
 0x263   : > { %v1526_v14 = vadd.f32 %v2539_v58, %v4057_v22  ;;  %v4061_v42 = vadd.f32 %v2600_v2, %v1523_v5  ;;  %v2603_v6 = vadd.f32 %v2602_v33, %v2601_v47 }
 0x265   : > { %v4063_v21 = vadd.f32 %v2603_v6, %v1526_v14 }
 0x267   : > { %v2540_v46 = vpop.f32.mrb[36].mxu0 }
 0x268   : > { %v2541_v23 = vpop.f32.mrb[37].mxu0 }
 0x269   : > { %v2542_v17 = vadd.f32 %v2541_v23, %v2540_v46  ;;  %v2543_v36 = vpop.f32.mrb[38].mxu0 }
 0x26a   : > { %v2544_v48 = vpop.f32.mrb[39].mxu0 }
 0x26b   : > { %v2545_v20 = vadd.f32 %v2544_v48, %v2543_v36  ;;  %v1531_v45 = vadd.f32 %v2542_v17, %v4057_v22 }
 0x26d   : > { %v1534_v31 = vadd.f32 %v2545_v20, %v4057_v22 }
 0x26f   : > { %v2604_v30 = vpop.f32.mrb[36].mxu1 }
 0x270   : > { %v2605_v56 = vpop.f32.mrb[37].mxu1 }
 0x271   : > { %v2606_v25 = vadd.f32 %v2605_v56, %v2604_v30  ;;  %v2607_v1 = vpop.f32.mrb[38].mxu1 }
 0x272   : > { %v2608_v49 = vpop.f32.mrb[39].mxu1 }
 0x273   : > { %v4067_v38 = vadd.f32 %v2606_v25, %v1531_v45  ;;  %v2609_v52 = vadd.f32 %v2608_v49, %v2607_v1 }
 0x275   : > { %v4069_v53 = vadd.f32 %v2609_v52, %v1534_v31 }
 0x279   : > { %v2546_v26 = vpop.f32.mrb[40].mxu0 }
 0x27a   : > { %v2547_v19 = vpop.f32.mrb[41].mxu0 }
 0x27b   : > { %v2548_v40 = vadd.f32 %v2547_v19, %v2546_v26  ;;  %v2549_v57 = vpop.f32.mrb[42].mxu0 }
 0x27c   : > { %v2550_v54 = vpop.f32.mrb[43].mxu0 }
 0x27d   : > { %v2551_v35 = vadd.f32 %v2550_v54, %v2549_v57  ;;  %v1539_v4 = vadd.f32 %v2548_v40, %v4057_v22 }
 0x27f   : > { %v1542_v50 = vadd.f32 %v2551_v35, %v4057_v22 }
 0x281   : > { %v2610_v41 = vpop.f32.mrb[40].mxu1 }
 0x282   : > { %v2611_v3 = vpop.f32.mrb[41].mxu1 }
 0x283   : > { %v2612_v55 = vadd.f32 %v2611_v3, %v2610_v41  ;;  %v2613_v37 = vpop.f32.mrb[42].mxu1 }
 0x284   : > { %v2614_v11 = vpop.f32.mrb[43].mxu1 }
 0x285   : > { %v4073_v10 = vadd.f32 %v2612_v55, %v1539_v4  ;;  %v2615_v39 = vadd.f32 %v2614_v11, %v2613_v37 }
 0x286   : > { %v2552_v12 = vpop.f32.mrb[44].mxu0 }
 0x287   : > { %v4075_v0 = vadd.f32 %v2615_v39, %v1542_v50  ;;  %v2553_v59 = vpop.f32.mrb[45].mxu0 }
 0x288   : > { %v2554_v61 = vadd.f32 %v2553_v59, %v2552_v12  ;;  %v2555_v16 = vpop.f32.mrb[46].mxu0 }
 0x289   : > { %v2556_v32 = vpop.f32.mrb[47].mxu0 }
 0x28a   : > { %v2557_v13 = vadd.f32 %v2556_v32, %v2555_v16  ;;  %v1547_v8 = vadd.f32 %v2554_v61, %v4057_v22 }
 0x28c   : > { %v1550_v27 = vadd.f32 %v2557_v13, %v4057_v22 }
 0x292   : > { %v2616_v28 = vpop.f32.mrb[44].mxu1 }
 0x293   : > { %v2617_v44 = vpop.f32.mrb[45].mxu1 }
 0x294   : > { %v2618_v29 = vadd.f32 %v2617_v44, %v2616_v28  ;;  %v2619_v51 = vpop.f32.mrb[46].mxu1 }
 0x295   : > { %v2620_v63 = vpop.f32.mrb[47].mxu1 }
 0x296   : > { %v2558_v43 = vpop.f32.mrb[48].mxu0  ;;  %v4079_v7 = vadd.f32 %v2618_v29, %v1547_v8  ;;  %v2621_v60 = vadd.f32 %v2620_v63, %v2619_v51 }
 0x297   : > { %v2559_v15 = vpop.f32.mrb[49].mxu0 }
 0x298   : > { %v2560_v34 = vadd.f32 %v2559_v15, %v2558_v43  ;;  %v2561_v9 = vpop.f32.mrb[50].mxu0  ;;  %v4081_v18 = vadd.f32 %v2621_v60, %v1550_v27 }
 0x299   : > { %v2562_v24 = vpop.f32.mrb[51].mxu0 }
 0x29a   : > { %v2563_v62 = vadd.f32 %v2562_v24, %v2561_v9  ;;  %v1555_v5 = vadd.f32 %v2560_v34, %v4057_v22  ;;  %v2622_v58 = vpop.f32.mrb[48].mxu1  ;;  %v4105_v34 = vld [vmem:[%s4233_s8] ss:$0 sm:$0xff] }
 0x29b   : > { %v2623_v2 = vpop.f32.mrb[49].mxu1 }
 0x29c   : > { %v1558_v47 = vadd.f32 %v2563_v62, %v4057_v22  ;;  %v2624_v33 = vadd.f32 %v2623_v2, %v2622_v58  ;;  %v2625_v14 = vpop.f32.mrb[50].mxu1 }
 0x29d   : > { %v2626_v6 = vpop.f32.mrb[51].mxu1 }
 0x29e   : > { %v2564_v46 = vpop.f32.mrb[52].mxu0  ;;  %v4085_v23 = vadd.f32 %v2624_v33, %v1555_v5  ;;  %v2627_v17 = vadd.f32 %v2626_v6, %v2625_v14 }
 0x29f   : > { %v2565_v36 = vpop.f32.mrb[53].mxu0 }
 0x2a0   : > { %v2566_v48 = vadd.f32 %v2565_v36, %v2564_v46  ;;  %v2567_v20 = vpop.f32.mrb[54].mxu0  ;;  %v4087_v45 = vadd.f32 %v2627_v17, %v1558_v47 }
 0x2a1   : > { %v2568_v30 = vpop.f32.mrb[55].mxu0 }
 0x2a2   : > { %v2569_v56 = vadd.f32 %v2568_v30, %v2567_v20  ;;  %v1563_v31 = vadd.f32 %v2566_v48, %v4057_v22  ;;  %v2628_v25 = vpop.f32.mrb[52].mxu1 }
 0x2a3   : > { %v2629_v1 = vpop.f32.mrb[53].mxu1 }
 0x2a4   : > { %v1566_v49 = vadd.f32 %v2569_v56, %v4057_v22  ;;  %v2630_v52 = vadd.f32 %v2629_v1, %v2628_v25  ;;  %v2631_v26 = vpop.f32.mrb[54].mxu1 }
 0x2a5   : > { %v2632_v19 = vpop.f32.mrb[55].mxu1 }
 0x2a6   : > { %v2570_v40 = vpop.f32.mrb[56].mxu0  ;;  %v4091_v57 = vadd.f32 %v2630_v52, %v1563_v31  ;;  %v2633_v54 = vadd.f32 %v2632_v19, %v2631_v26 }
 0x2a7   : > { %v2571_v35 = vpop.f32.mrb[57].mxu0 }
 0x2a8   : > { %v2572_v4 = vadd.f32 %v2571_v35, %v2570_v40  ;;  %v2573_v41 = vpop.f32.mrb[58].mxu0  ;;  %v4093_v3 = vadd.f32 %v2633_v54, %v1566_v49 }
 0x2a9   : > { %v2574_v50 = vpop.f32.mrb[59].mxu0 }
 0x2aa   : > { %v2575_v55 = vadd.f32 %v2574_v50, %v2573_v41  ;;  %v1571_v37 = vadd.f32 %v2572_v4, %v4057_v22  ;;  %v2634_v11 = vpop.f32.mrb[56].mxu1 }
 0x2ab   : > { %v2635_v39 = vpop.f32.mrb[57].mxu1 }
 0x2ac   : > { %v1574_v12 = vadd.f32 %v2575_v55, %v4057_v22  ;;  %v2636_v59 = vadd.f32 %v2635_v39, %v2634_v11  ;;  %v2637_v61 = vpop.f32.mrb[58].mxu1 }
 0x2ad   : > { %v2638_v16 = vpop.f32.mrb[59].mxu1 }
 0x2ae   : > { %v2576_v32 = vpop.f32.mrb[60].mxu0  ;;  %v4097_v13 = vadd.f32 %v2636_v59, %v1571_v37  ;;  %v2639_v8 = vadd.f32 %v2638_v16, %v2637_v61 }
 0x2af   : > { %v2577_v28 = vpop.f32.mrb[61].mxu0 }
 0x2b0   : > { %v2578_v44 = vadd.f32 %v2577_v28, %v2576_v32  ;;  %v2579_v27 = vpop.f32.mrb[62].mxu0  ;;  %v4099_v29 = vadd.f32 %v2639_v8, %v1574_v12 }
 0x2b1   : > { %v2580_v51 = vpop.f32.mrb[63].mxu0 }
 0x2b2   : > { %v2581_v63 = vadd.f32 %v2580_v51, %v2579_v27  ;;  %v1579_v43 = vadd.f32 %v2578_v44, %v4057_v22  ;;  %v2640_v60 = vpop.f32.mrb[60].mxu1 }
 0x2b3   : > { %v2641_v15 = vpop.f32.mrb[61].mxu1 }
 0x2b4   : > { %v1582_v9 = vadd.f32 %v2581_v63, %v4057_v22  ;;  %v2642_v24 = vadd.f32 %v2641_v15, %v2640_v60  ;;  %v2643_v62 = vpop.f32.mrb[62].mxu1 }
 0x2b5   : > { %v2644_v5 = vpop.f32.mrb[63].mxu1 }
 0x2b6   : > { %v2689_v58 = vpop.f32.mrb[64].mxu0  ;;  %v4108_v2 = vadd.f32 %v2642_v24, %v1579_v43  ;;  %v2645_v47 = vadd.f32 %v2644_v5, %v2643_v62 }
 0x2b7   : > { %v2059_v33 = vadd.f32 %v2689_v58, %v4105_v34  ;;  %v2050_v14 = vpop.f32.mrb[65].mxu0 }
 0x2b8   : > { %v2051_v6 = vadd.f32 %v4105_v34, %v2050_v14  ;;  %v2690_v46 = vpop.f32.mrb[66].mxu0  ;;  %v4112_v17 = vadd.f32 %v2645_v47, %v1582_v9 }
 0x2b9   : > { %v2062_v36 = vadd.f32 %v2690_v46, %v4105_v34  ;;  %v2053_v48 = vpop.f32.mrb[67].mxu0  ;;  %v2115_v20 = vmax.f32 %v2059_v33, 0.0 }
 0x2ba   : > { %v2054_v22 = vadd.f32 %v4105_v34, %v2053_v48  ;;  %v2113_v56 = vmax.f32 %v2051_v6, 0.0 }
 0x2bb   : > { %v2116_v30 = vmax.f32 %v2062_v36, 0.0 }
 0x2bc   : > { %v2114_v31 = vmax.f32 %v2054_v22, 0.0 }
 0x2bd   : > { %v2130_v25 = vpack.c.bf16 %v2116_v30, %v2115_v20  ;;  %v2501_v30 = vld [vmem:[%s4235_s10] ss:$0 sm:$0xff] }
 0x2be   : > { %v2129_v1 = vpack.c.bf16 %v2114_v31, %v2113_v56  ;;  %v2693_v49 = vpop.f32.mrb[68].mxu0 }
 0x2bf   : > { %v2075_v52 = vadd.f32 %v2693_v49, %v4105_v34  ;;  %v2066_v26 = vpop.f32.mrb[69].mxu0 }
 0x2c0   : > { %v2067_v19 = vadd.f32 %v4105_v34, %v2066_v26  ;;  %v2694_v40 = vpop.f32.mrb[70].mxu0  ;;  %2705 = vmatprep.mubr.msk.bf16.mxu1 %vm2152_vm0, %v2129_v1 }
 0x2c1   : > { %v2078_v54 = vadd.f32 %v2694_v40, %v4105_v34  ;;  %v2069_v35 = vpop.f32.mrb[71].mxu0  ;;  %2706 = vmatmul.mubr.msk.bf16.vlgmr.msra.gmra.mrb[64].mxu1 %vm2152_vm0, %v2130_v25  ;;  %v2119_v41 = vmax.f32 %v2075_v52, 0.0 }
 0x2c2   : > { %v2070_v4 = vadd.f32 %v4105_v34, %v2069_v35  ;;  %v2117_v55 = vmax.f32 %v2067_v19, 0.0 }
 0x2c3   : > { %v2120_v50 = vmax.f32 %v2078_v54, 0.0 }
 0x2c4   : > { %v2118_v37 = vmax.f32 %v2070_v4, 0.0 }
 0x2c5   : > { %v2132_v11 = vpack.c.bf16 %v2120_v50, %v2119_v41 }
 0x2c6   : > { %v2131_v39 = vpack.c.bf16 %v2118_v37, %v2117_v55  ;;  %v2697_v12 = vpop.f32.mrb[72].mxu0 }
 0x2c7   : > { %v2091_v59 = vadd.f32 %v2697_v12, %v4105_v34  ;;  %v2082_v61 = vpop.f32.mrb[73].mxu0 }
 0x2c8   : > { %v2083_v16 = vadd.f32 %v4105_v34, %v2082_v61  ;;  %v2698_v32 = vpop.f32.mrb[74].mxu0  ;;  %2709 = vmatprep.mubr.msk.bf16.mxu1 %vm2152_vm0, %v2131_v39 }
 0x2c9   : > { %v2094_v8 = vadd.f32 %v2698_v32, %v4105_v34  ;;  %v2085_v28 = vpop.f32.mrb[75].mxu0  ;;  %2710 = vmatmul.mubr.msk.bf16.gmra.mrb[68].mxu1 %vm2152_vm0, %v2132_v11  ;;  %v2123_v27 = vmax.f32 %v2091_v59, 0.0 }
 0x2ca   : > { %v2086_v44 = vadd.f32 %v4105_v34, %v2085_v28  ;;  %v2121_v63 = vmax.f32 %v2083_v16, 0.0 }
 0x2cb   : > { %v2124_v51 = vmax.f32 %v2094_v8, 0.0 }
 0x2cc   : > { %v2122_v43 = vmax.f32 %v2086_v44, 0.0 }
 0x2cd   : > { %v2134_v60 = vpack.c.bf16 %v2124_v51, %v2123_v27 }
 0x2ce   : > { %v2133_v15 = vpack.c.bf16 %v2122_v43, %v2121_v63  ;;  %v2701_v9 = vpop.f32.mrb[76].mxu0 }
 0x2cf   : > { %v2107_v24 = vadd.f32 %v2701_v9, %v4105_v34  ;;  %v2098_v62 = vpop.f32.mrb[77].mxu0 }
 0x2d0   : > { %v2099_v5 = vadd.f32 %v4105_v34, %v2098_v62  ;;  %v2702_v58 = vpop.f32.mrb[78].mxu0  ;;  %2713 = vmatprep.mubr.msk.bf16.mxu1 %vm2152_vm0, %v2133_v15 }
 0x2d1   : > { %v2110_v47 = vadd.f32 %v2702_v58, %v4105_v34  ;;  %v2101_v33 = vpop.f32.mrb[79].mxu0  ;;  %2714 = vmatmul.mubr.msk.bf16.gmra.mrb[72].mxu1 %vm2152_vm0, %v2134_v60  ;;  %v2127_v6 = vmax.f32 %v2107_v24, 0.0 }
 0x2d2   : > { %v2102_v14 = vadd.f32 %v4105_v34, %v2101_v33  ;;  %v2125_v36 = vmax.f32 %v2099_v5, 0.0 }
 0x2d3   : > { %v2128_v46 = vmax.f32 %v2110_v47, 0.0 }
 0x2d4   : > { %v2126_v48 = vmax.f32 %v2102_v14, 0.0 }
 0x2d5   : > { %v2136_v22 = vpack.c.bf16 %v2128_v46, %v2127_v6 }
 0x2d6   : > { %v2135_v20 = vpack.c.bf16 %v2126_v48, %v2125_v36 }
 0x2d8   : > { %2717 = vmatprep.mubr.msk.bf16.mxu1 %vm2152_vm0, %v2135_v20 }
 0x2d9   : > { %2718 = vmatmul.mubr.msk.bf16.gmra.mrb[76].mxu1 %vm2152_vm0, %v2136_v22 }
 0x394   : > { %v2707_v56 = vpop.f32.mrb[64].mxu1 }
 0x395   : > { %v2220_v31 = vadd.f32 %v2707_v56, %v2501_v30  ;;  %v2211_v25 = vpop.f32.mrb[65].mxu1 }
 0x396   : > { %v2212_v1 = vadd.f32 %v2501_v30, %v2211_v25  ;;  %v2708_v34 = vpop.f32.mrb[66].mxu1 }
 0x397   : > { %v2276_v49 = vadd.f32 %v2220_v31, %v4067_v38  ;;  %v2223_v52 = vadd.f32 %v2708_v34, %v2501_v30  ;;  %v2214_v26 = vpop.f32.mrb[67].mxu1 }
 0x398   : > { %v2274_v19 = vadd.f32 %v2212_v1, %v4061_v42  ;;  %v2215_v40 = vadd.f32 %v2501_v30, %v2214_v26 }
 0x399   : > { %2292 = vst [vmem:[%s4143_s24 + $0x10] sm:$0xff] %v2276_v49  ;;  %v2277_v54 = vadd.f32 %v2223_v52, %v4069_v53 }
 0x39a   : > { %2290 = vst [vmem:[%s4143_s24] sm:$0xff] %v2274_v19  ;;  %v2275_v38 = vadd.f32 %v2215_v40, %v4063_v21 }
 0x39b   : > { %2293 = vst [vmem:[%s4143_s24 + $0x18] sm:$0xff] %v2277_v54 }
 0x39c   : > { %2291 = vst [vmem:[%s4143_s24 + $0x8] sm:$0xff] %v2275_v38  ;;  %v2711_v42 = vpop.f32.mrb[68].mxu1 }
 0x39d   : > { %v2236_v35 = vadd.f32 %v2711_v42, %v2501_v30  ;;  %v2227_v4 = vpop.f32.mrb[69].mxu1 }
 0x39e   : > { %v2228_v41 = vadd.f32 %v2501_v30, %v2227_v4  ;;  %v2712_v50 = vpop.f32.mrb[70].mxu1 }
 0x39f   : > { %v2280_v55 = vadd.f32 %v2236_v35, %v4079_v7  ;;  %v2239_v37 = vadd.f32 %v2712_v50, %v2501_v30  ;;  %v2230_v11 = vpop.f32.mrb[71].mxu1 }
 0x3a0   : > { %v2278_v39 = vadd.f32 %v2228_v41, %v4073_v10  ;;  %v2231_v53 = vadd.f32 %v2501_v30, %v2230_v11 }
 0x3a1   : > { %2296 = vst [vmem:[%s4143_s24 + $0x30] sm:$0xff] %v2280_v55  ;;  %v2281_v21 = vadd.f32 %v2239_v37, %v4081_v18 }
 0x3a2   : > { %2294 = vst [vmem:[%s4143_s24 + $0x20] sm:$0xff] %v2278_v39  ;;  %v2279_v12 = vadd.f32 %v2231_v53, %v4075_v0 }
 0x3a3   : > { %2297 = vst [vmem:[%s4143_s24 + $0x38] sm:$0xff] %v2281_v21 }
 0x3a4   : > { %2295 = vst [vmem:[%s4143_s24 + $0x28] sm:$0xff] %v2279_v12  ;;  %v2715_v59 = vpop.f32.mrb[72].mxu1 }
 0x3a5   : > { %v2252_v61 = vadd.f32 %v2715_v59, %v2501_v30  ;;  %v2243_v7 = vpop.f32.mrb[73].mxu1 }
 0x3a6   : > { %v2244_v16 = vadd.f32 %v2501_v30, %v2243_v7  ;;  %v2716_v32 = vpop.f32.mrb[74].mxu1 }
 0x3a7   : > { %v2284_v10 = vadd.f32 %v2252_v61, %v4091_v57  ;;  %v2255_v8 = vadd.f32 %v2716_v32, %v2501_v30  ;;  %v2246_v28 = vpop.f32.mrb[75].mxu1 }
 0x3a8   : > { %v2282_v18 = vadd.f32 %v2244_v16, %v4085_v23  ;;  %v2247_v44 = vadd.f32 %v2501_v30, %v2246_v28 }
 0x3a9   : > { %2300 = vst [vmem:[%s4143_s24 + $0x50] sm:$0xff] %v2284_v10  ;;  %v2285_v0 = vadd.f32 %v2255_v8, %v4093_v3 }
 0x3aa   : > { %2298 = vst [vmem:[%s4143_s24 + $0x40] sm:$0xff] %v2282_v18  ;;  %v2283_v27 = vadd.f32 %v2247_v44, %v4087_v45 }
 0x3ab   : > { %2301 = vst [vmem:[%s4143_s24 + $0x58] sm:$0xff] %v2285_v0 }
 0x3ac   : > { %2299 = vst [vmem:[%s4143_s24 + $0x48] sm:$0xff] %v2283_v27  ;;  %v2719_v51 = vpop.f32.mrb[76].mxu1 }
 0x3ad   : > { %v2268_v63 = vadd.f32 %v2719_v51, %v2501_v30  ;;  %v2259_v57 = vpop.f32.mrb[77].mxu1 }
 0x3ae   : > { %v2260_v43 = vadd.f32 %v2501_v30, %v2259_v57  ;;  %v2720_v60 = vpop.f32.mrb[78].mxu1 }
 0x3af   : > { %v2288_v23 = vadd.f32 %v2268_v63, %v4108_v2  ;;  %v2271_v3 = vadd.f32 %v2720_v60, %v2501_v30  ;;  %v2262_v15 = vpop.f32.mrb[79].mxu1 }
 0x3b0   : > { %v2286_v45 = vadd.f32 %v2260_v43, %v4097_v13  ;;  %v2263_v9 = vadd.f32 %v2501_v30, %v2262_v15 }
 0x3b1   : > { %2304 = vst [vmem:[%s4143_s24 + $0x70] sm:$0xff] %v2288_v23  ;;  %v2289_v24 = vadd.f32 %v2271_v3, %v4112_v17 }
 0x3b2   : > { %2302 = vst [vmem:[%s4143_s24 + $0x60] sm:$0xff] %v2286_v45  ;;  %v2287_v2 = vadd.f32 %v2263_v9, %v4099_v29 }
 0x3b3   : > { %2305 = vst [vmem:[%s4143_s24 + $0x78] sm:$0xff] %v2289_v24 }
 0x3b4   : > { %2303 = vst [vmem:[%s4143_s24 + $0x68] sm:$0xff] %v2287_v2 }
 0x3b5   : > { %3091 = shalt.err (!%p3088_p7)
}
 0x3b6   : > { %s3092_s11 = scalar_lea.hbm %s4176_s15, 2048  ;;  %s3096_s14 = scalar_lea.hbm %s4305_s27, 8192 }
 0x3b7   : > { %p3093_p9 = scmp.ne.s32.totalorder %s4176_s15, %s3092_s11  ;;  %p3097_p5 = scmp.lt.u32.totalorder %s4176_s15, %s4305_s27 }
 0x3b8   : > { %p3098_p10 = scmp.lt.u32.totalorder %s3096_s14, %s3092_s11  ;;  %p3100_p1 = scmp.lt.u32.totalorder %s3092_s11, %s4176_s15 }
 0x3b9   : > { %p3094_p12 = pnand %p3093_p9, %p3338_p6 }
 0x3ba   : > { %p3099_p11 = por %p3098_p10, %p3097_p5 }
 0x3bb   : > { %p3095_p0 = pneg %p3094_p12 }
 0x3bc   : > { %p3101_p2 = por %p3100_p1, %p3099_p11 }
 0x3be   : > { %p3102_p4 = pnand %p3101_p2, %p3095_p0 }
 0x3c0   : > { %3105 = shalt.err (!%p3102_p4)
}
 0x3c1   : > { %s3161_s29 = smov 128   ;;  %s3162_s23 = smov 8  }
 0x3c2   : > { %2731 = dma.vmem_to_hbm [thread:$0]  (%p3338_p6), %s4178_s12, 2048, %s4176_s15, %s2307_s21, %s3161_s29, %s3161_s29, %s3162_s23  }
 0x3c3 PF: > { %s4306_s25 = sld [smem:[#allocation12_spill]]  ;;  %s4307_s24 = sld [smem:[#allocation13_spill]] }
 0x3c4   : > { %p2753_p8 = scmp.ge.s32.totalorder %s3148_s20, 2 }
 0x3c9   : > { %s2335_s28 = sand.u32 1, %s4306_s25   ;;  %p4308_p13 = scmp.ne.s32.totalorder %s4307_s24, 0 }
 0x3ca   : > { %s2336_s11 = scalar_lea.sflag [#allocation4], %s2335_s28 }
 0x3cb   : > { %p2745_p3 = pnand %p2753_p8, %p4308_p13 }
 0x3cd   : > { %3131 = dma.done.wait (!%p2745_p3), %s2336_s11, 2048  }
 0x3ce   : > { %3133 = vsyncadd (!%p2745_p3), %s2336_s11, 4294965248  ;;  %p25_p7 = scmp.ge.s32.totalorder %s3325_s13, 6   ;;  %s4309_s17 = smov %s3140_s18 }
 0x3cf   : > { %s4310_s18 = smov %s3144_s19  ;;  %s4311_s19 = smov %s3334_s16 }
 0x3d0   : > { %s4312_s20 = smov %s3325_s13  ;;  %27 = sbr.rel (!%p25_p7) target bundleno = 8 (0x8), region = 117 }
 0x3d7   :  { %2341 = vsyncpa [#allocation3], 1 }
 0x3d8   :  { %2343 = vsyncpa [#allocation3 + $0x1], 1 }
 0x3d9   :  { %2344 = vsyncpa [#allocation6], 1 }
 0x3da   :  { %2345 = vsyncpa [#allocation4], 1 }
 0x3db   :  { %2347 = vsyncpa [#allocation4 + $0x1], 1 }

</bundles_post_ra>
